<compile_context>
chip_gen: v7x
topology: tpu7x:2x2x1
jax: 0.10.0
libtpu: 0.0.40
codegen_flags: <defaults>
</compile_context>

<pallas_src>
import numpy as np
import jax
import jax.numpy as jnp
from jax.experimental import pallas as pl
from jax.experimental.pallas import tpu as pltpu

N_QUBITS = 4
N_LAYERS = 2
DIM = 2 ** N_QUBITS                 # 16 statevector amplitudes
SQRT_HALF = 0.7071067811865476
INV_SQRT_NQ = 1.0 / float(np.sqrt(N_QUBITS))


# ----------------------------------------------------------------------------
# Circuit -> quadratic-form reduction (parameter setup, plain numpy glue).
# Qubit q maps to bit q of the basis index (LSB convention, used consistently
# for U, D and phi, so the scalar result equals PennyLane's).
# ----------------------------------------------------------------------------
def _build_quantum_quadratic_form(weights):
    I2 = np.eye(2, dtype=np.complex128)

    def single(gate, q):
        op = np.eye(1, dtype=np.complex128)
        for qq in range(N_QUBITS - 1, -1, -1):
            op = np.kron(op, gate if qq == q else I2)
        return op

    def rx(t):
        c, s = np.cos(t / 2.0), np.sin(t / 2.0)
        return np.array([[c, -1j * s], [-1j * s, c]], dtype=np.complex128)

    def ry(t):
        c, s = np.cos(t / 2.0), np.sin(t / 2.0)
        return np.array([[c, -s], [s, c]], dtype=np.complex128)

    def rz(t):
        return np.array([[np.exp(-1j * t / 2.0), 0.0],
                         [0.0, np.exp(1j * t / 2.0)]], dtype=np.complex128)

    def cnot(ctrl, tgt):
        m = np.zeros((DIM, DIM), dtype=np.complex128)
        for i in range(DIM):
            j = i ^ (1 << tgt) if (i >> ctrl) & 1 else i
            m[j, i] = 1.0
        return m

    U = np.eye(DIM, dtype=np.complex128)
    p = 0
    for _ in range(N_LAYERS):
        for q in range(N_QUBITS):
            U = single(rx(weights[p]), q) @ U
            U = single(ry(weights[p + 1]), q) @ U
            U = single(rz(weights[p + 2]), q) @ U
            p += 3
        for q in range(N_QUBITS - 1):
            U = cnot(q, q + 1) @ U
        if N_QUBITS > 2:
            U = cnot(N_QUBITS - 1, 0) @ U

    d = np.array([sum(1.0 - 2.0 * ((i >> q) & 1) for q in range(N_QUBITS))
                  for i in range(DIM)])
    M = np.real(U.conj().T @ (d[:, None] * U))
    return M.astype(np.float32)


# ----------------------------------------------------------------------------
# In-kernel helpers
# ----------------------------------------------------------------------------
def _layer_norm(h, g, b):
    mu = jnp.mean(h, axis=-1, keepdims=True)
    var = jnp.mean((h - mu) ** 2, axis=-1, keepdims=True)
    return (h - mu) * jax.lax.rsqrt(var + 1e-5) * g + b


def _gelu_exact(h):
    return 0.5 * h * (1.0 + jax.lax.erf(h * SQRT_HALF))


def _cos_small(x):
    # Valid for |x| < 0.5 (x = 0.5*tanh(...)); truncation error < 3e-10, i.e.
    # below f32 roundoff -> numerically identical to jnp.cos here.  Pure VPU.
    x2 = x * x
    return 1.0 + x2 * (-0.5 + x2 * (1.0 / 24.0
                 + x2 * (-1.0 / 720.0 + x2 * (1.0 / 40320.0))))


def _sin_small(x):
    x2 = x * x
    return x * (1.0 + x2 * (-1.0 / 6.0 + x2 * (1.0 / 120.0
                + x2 * (-1.0 / 5040.0 + x2 * (1.0 / 362880.0)))))


# ----------------------------------------------------------------------------
# Pallas kernel: one (batch, query-tile) per grid step.
# ----------------------------------------------------------------------------
def hybrid_block_kernel(xq_ref, x_ref, xT_ref,
                        wqr_ref, wkT_ref, wvo_ref, m_ref, ln_ref, w1_ref, w2_ref,
                        out_ref, attn_ref):
    S = x_ref.shape[1]
    E = x_ref.shape[2]
    TQ = xq_ref.shape[1]
    F = w1_ref.shape[1]
    NQ = N_QUBITS

    x_q = xq_ref[0]          # (TQ, E) query-tile rows (residual / FFN path)
    x_full = x_ref[0]        # (S,  E) full sequence   (value path)
    xT_full = xT_ref[0]      # (E,  S) pre-transposed full sequence (key path)

    # ---- projections -------------------------------------------------------
    # Q for the query tile (row-major); K for the full sequence computed
    # directly in transposed form so keys live on the 128-lane axis.
    q = jnp.tanh(jnp.dot(x_q, wqr_ref[0:E, :],
                         preferred_element_type=jnp.float32)
                 + wqr_ref[E:E + 1, :])                               # (TQ, NQ)
    kT = jnp.tanh(jnp.dot(wkT_ref[:, 0:E], xT_full,
                          preferred_element_type=jnp.float32)
                  + wkT_ref[:, E:E + 1])                              # (NQ, S)

    # ---- pairwise circuit angles (lane-dense: keys on lanes) ---------------
    comb = jnp.tanh(q[:, :, None] + kT[None, :, :])                   # (TQ, NQ, S)
    half = 0.5 * comb                                                 # |half| < 0.5
    ch = _cos_small(half)
    sh = _sin_small(half)

    # RY-encoded (real) statevector via separable kron products:
    # phi[i, a, j] with bit q of a <-> qubit q (LSB), matching M's basis.
    c0, s0 = ch[:, 0:1, :], sh[:, 0:1, :]
    c1, s1 = ch[:, 1:2, :], sh[:, 1:2, :]
    c2, s2 = ch[:, 2:3, :], sh[:, 2:3, :]
    c3, s3 = ch[:, 3:4, :], sh[:, 3:4, :]
    p01 = jnp.concatenate([c0 * c1, s0 * c1, c0 * s1, s0 * s1], axis=1)   # (TQ, 4, S)
    p23 = jnp.concatenate([c2 * c3, s2 * c3, c2 * s3, s2 * s3], axis=1)   # (TQ, 4, S)
    phi = jnp.concatenate([p01 * p23[:, i:i + 1, :] for i in range(4)],
                          axis=1)                                          # (TQ, 16, S)

    # quadratic form score(i,j) = phi^T M phi : batched (16,16)@(16,S) matmul
    # with a lane-dense N = S output, then a sublane reduce.
    m3 = jnp.broadcast_to(m_ref[...][None, :, :], (TQ, DIM, DIM))
    mphi = jnp.einsum('iab,ibs->ias', m3, phi,
                      preferred_element_type=jnp.float32)                  # (TQ, 16, S)
    scores = jnp.sum(phi * mphi, axis=1)                                   # (TQ, S)

    # ---- softmax(scores / sqrt(n_qubits)) over keys ------------------------
    logits = scores * INV_SQRT_NQ
    logits = logits - jnp.max(logits, axis=-1, keepdims=True)
    unnorm = jnp.exp(logits)
    denom = jnp.sum(unnorm, axis=-1, keepdims=True)
    r = pl.reciprocal(denom, approx=True)
    r = r * (2.0 - denom * r)            # one Newton step -> full f32 accuracy
    attn = unnorm * r                    # (TQ, S)

    # ---- value + output projection (Wvo = Wv Wo folded host-side) ----------
    vo = jnp.dot(x_full, wvo_ref[0:E, :],
                 preferred_element_type=jnp.float32)                       # (S, E)
    attn_out = jnp.dot(attn, vo,
                       preferred_element_type=jnp.float32) + wvo_ref[E:E + 1, :]

    # ---- residual + LN1, classical FFN (exact erf GELU), LN_ffn, LN2 -------
    x1 = _layer_norm(x_q + attn_out, ln_ref[0:1, :], ln_ref[1:2, :])
    h = _gelu_exact(jnp.dot(x1, w1_ref[0:E, :],
                            preferred_element_type=jnp.float32) + w1_ref[E:E + 1, :])
    y = jnp.dot(h, w2_ref[0:F, :],
                preferred_element_type=jnp.float32) + w2_ref[F:F + 1, :]
    ff = _layer_norm(y + x1, ln_ref[2:3, :], ln_ref[3:4, :])
    out = _layer_norm(x1 + ff, ln_ref[4:5, :], ln_ref[5:6, :])

    out_ref[0] = out.astype(out_ref.dtype)
    attn_ref[0] = attn.astype(attn_ref.dtype)


# ----------------------------------------------------------------------------
# Parameter packing: 18 small tensors -> 6 blocks (bias rides as an extra row
# or column of its weight) + M.  Wv/Wo are folded into one (E,E) matrix (exact,
# since softmax rows sum to 1 the bias folds as bv Wo + bo).
# ----------------------------------------------------------------------------
def _pack_params(p):
    hi = jax.lax.Precision.HIGHEST
    wqr = jnp.concatenate([p['wq'], p['bq']], axis=0)                      # (E+1, Q)
    wkT = jnp.concatenate([p['wk'].T, p['bk'].T], axis=1)                  # (Q, E+1)
    wvo = jnp.concatenate(
        [jnp.dot(p['wv'], p['wo'], precision=hi),
         jnp.dot(p['bv'], p['wo'], precision=hi) + p['bo']], axis=0)       # (E+1, E)
    ln = jnp.concatenate([p['ln1g'], p['ln1b'], p['lnfg'], p['lnfb'],
                          p['ln2g'], p['ln2b']], axis=0)                   # (6, E)
    w1 = jnp.concatenate([p['w1'], p['b1']], axis=0)                       # (E+1, F)
    w2 = jnp.concatenate([p['w2'], p['b2']], axis=0)                       # (F+1, E)
    return wqr, wkT, wvo, ln, w1, w2


# ----------------------------------------------------------------------------
# Wrapper
# ----------------------------------------------------------------------------
@jax.jit
def hybrid_transformer_block(x, params):
    B, S, E = x.shape
    F = params['w1'].shape[1]
    NQ = N_QUBITS

    # Query-tile size: bound the (TQ, 16, S) pairwise intermediates (~6 live
    # f32 copies) to ~8 MiB so large-S cases keep headroom on v7x's 64 MiB VMEM.
    max_pairs = (8 * 1024 * 1024) // (6 * DIM * 4)          # max TQ * S elements
    TQ = S
    while TQ * S > max_pairs and TQ % 16 == 0:
        TQ //= 2
    assert S % TQ == 0, "seq_len must be divisible by the query tile"
    n_qt = S // TQ
    # TODO(synk): for very long sequences also tile the key axis (online softmax).

    xT = jnp.transpose(x, (0, 2, 1))                        # (B, E, S) layout plumbing
    wqr, wkT, wvo, ln, w1, w2 = _pack_params(params)

    in_specs = [
        pl.BlockSpec((1, TQ, E), lambda b, qt: (b, qt, 0)),     # x  : query tile
        pl.BlockSpec((1, S, E), lambda b, qt: (b, 0, 0)),       # x  : full sequence
        pl.BlockSpec((1, E, S), lambda b, qt: (b, 0, 0)),       # x^T: full sequence
        pl.BlockSpec((E + 1, NQ), lambda b, qt: (0, 0)),        # Wq | bq
        pl.BlockSpec((NQ, E + 1), lambda b, qt: (0, 0)),        # Wk^T | bk
        pl.BlockSpec((E + 1, E), lambda b, qt: (0, 0)),         # WvWo | bvWo+bo
        pl.BlockSpec((DIM, DIM), lambda b, qt: (0, 0)),         # M
        pl.BlockSpec((6, E), lambda b, qt: (0, 0)),             # LN gains/biases
        pl.BlockSpec((E + 1, F), lambda b, qt: (0, 0)),         # W1 | b1
        pl.BlockSpec((F + 1, E), lambda b, qt: (0, 0)),         # W2 | b2
    ]
    out_specs = (pl.BlockSpec((1, TQ, E), lambda b, qt: (b, qt, 0)),
                 pl.BlockSpec((1, TQ, S), lambda b, qt: (b, qt, 0)))
    out_shape = (jax.ShapeDtypeStruct((B, S, E), jnp.float32),
                 jax.ShapeDtypeStruct((B, S, S), jnp.float32))

    fn = pl.pallas_call(
        hybrid_block_kernel,
        out_shape=out_shape,
        grid_spec=pltpu.PrefetchScalarGridSpec(
            num_scalar_prefetch=0,
            grid=(B, n_qt),
            in_specs=in_specs,
            out_specs=out_specs),
        compiler_params=pltpu.CompilerParams(
            dimension_semantics=("parallel", "parallel"),
            # explicit scoped-VMEM limit: <= half of v7x's 64 MiB per TensorCore
            vmem_limit_bytes=32 * 1024 * 1024),
    )
    return fn(x, x, xT, wqr, wkT, wvo, params['M'], ln, w1, w2)


# ----------------------------------------------------------------------------
# Pure-JAX reference (original, unfused math) for verification.
# ----------------------------------------------------------------------------
def reference_forward(x, p):
    def ln(h, g, b):
        mu = jnp.mean(h, -1, keepdims=True)
        var = jnp.mean((h - mu) ** 2, -1, keepdims=True)
        return (h - mu) * jax.lax.rsqrt(var + 1e-5) * g + b

    q = jnp.tanh(x @ p['wq'] + p['bq'])
    k = jnp.tanh(x @ p['wk'] + p['bk'])
    v = x @ p['wv'] + p['bv']

    combined = jnp.tanh(q[:, :, None, :] + k[:, None, :, :])      # (B,S,S,Q)
    half = 0.5 * combined
    c, s = jnp.cos(half), jnp.sin(half)
    idx = np.arange(DIM)
    phi = jnp.ones(combined.shape[:3] + (DIM,), jnp.float32)
    for qb in range(N_QUBITS):
        bit = (idx >> qb) & 1
        phi = phi * jnp.where(bit == 1, s[..., qb:qb + 1], c[..., qb:qb + 1])

    scores = jnp.einsum('bijk,kl,bijl->bij', phi, p['M'], phi)
    attn = jax.nn.softmax(scores * INV_SQRT_NQ, axis=-1)
    attended = jnp.einsum('bij,bjq->biq', attn, v)
    attn_out = attended @ p['wo'] + p['bo']

    x1 = ln(x + attn_out, p['ln1g'], p['ln1b'])
    h = x1 @ p['w1'] + p['b1']
    h = 0.5 * h * (1.0 + jax.lax.erf(h * SQRT_HALF))
    y = h @ p['w2'] + p['b2']
    ff = ln(y + x1, p['lnfg'], p['lnfb'])
    return ln(x1 + ff, p['ln2g'], p['ln2b']), attn


# ----------------------------------------------------------------------------
# Deterministic parameter init (synthetic; not a checkpoint load).
# ----------------------------------------------------------------------------
def init_params(key, embed_dim, ff_dim):
    ks = jax.random.split(key, 24)
    E, Q, F = embed_dim, N_QUBITS, ff_dim

    def nrm(k, shape, scale):
        return (scale * jax.random.normal(k, shape)).astype(jnp.float32)

    p = {
        'wq': nrm(ks[0], (E, Q), 1.0 / np.sqrt(E)), 'bq': nrm(ks[1], (1, Q), 0.02),
        'wk': nrm(ks[2], (E, Q), 1.0 / np.sqrt(E)), 'bk': nrm(ks[3], (1, Q), 0.02),
        'wv': nrm(ks[4], (E, Q), 1.0 / np.sqrt(E)), 'bv': nrm(ks[5], (1, Q), 0.02),
        'wo': nrm(ks[6], (Q, E), 1.0 / np.sqrt(Q)), 'bo': nrm(ks[7], (1, E), 0.02),
        'ln1g': 1.0 + nrm(ks[8], (1, E), 0.05), 'ln1b': nrm(ks[9], (1, E), 0.05),
        'w1': nrm(ks[10], (E, F), 1.0 / np.sqrt(E)), 'b1': nrm(ks[11], (1, F), 0.02),
        'w2': nrm(ks[12], (F, E), 1.0 / np.sqrt(F)), 'b2': nrm(ks[13], (1, E), 0.02),
        'lnfg': 1.0 + nrm(ks[14], (1, E), 0.05), 'lnfb': nrm(ks[15], (1, E), 0.05),
        'ln2g': 1.0 + nrm(ks[16], (1, E), 0.05), 'ln2b': nrm(ks[17], (1, E), 0.05),
    }
    quantum_weights = 0.1 * np.asarray(
        jax.random.normal(ks[18], (N_LAYERS * N_QUBITS * 3,)), dtype=np.float64)
    p['M'] = jnp.asarray(_build_quantum_quadratic_form(quantum_weights))
    return p


if __name__ == "__main__":
    B, S, E, F = 2, 8, 32, 64        # small shapes consistent with (B, S, E) forward
    key = jax.random.PRNGKey(0)
    kx, kp = jax.random.split(key)
    x = jax.random.normal(kx, (B, S, E), jnp.float32)
    params = init_params(kp, E, F)

    out, attn = hybrid_transformer_block(x, params)
    out = jax.block_until_ready(out)
    attn = jax.block_until_ready(attn)

    ref_out, ref_attn = reference_forward(x, params)
    # The fast paths introduced (polynomial cos/sin, Newton-refined reciprocal,
    # host-folded Wv@Wo) are exact to <1e-7; tolerance only absorbs MXU
    # matmul-precision differences between Mosaic and XLA lowering.
    np.testing.assert_allclose(np.asarray(out), np.asarray(ref_out),
                               rtol=5e-3, atol=1e-3)
    np.testing.assert_allclose(np.asarray(attn), np.asarray(ref_attn),
                               rtol=5e-3, atol=1e-3)
    print("KERNEL_OK")
</pallas_src>

<mosaic_0001>
module attributes {stable_mosaic.version = 11 : i64} {
  func.func @hybrid_block_kernel(%arg0: i32, %arg1: i32, %arg2: memref<1x8x32xf32, #tpu.memory_space<vmem>>, %arg3: memref<1x8x32xf32, #tpu.memory_space<vmem>>, %arg4: memref<1x32x8xf32, #tpu.memory_space<vmem>>, %arg5: memref<33x4xf32, #tpu.memory_space<vmem>>, %arg6: memref<4x33xf32, #tpu.memory_space<vmem>>, %arg7: memref<33x32xf32, #tpu.memory_space<vmem>>, %arg8: memref<16x16xf32, #tpu.memory_space<vmem>>, %arg9: memref<6x32xf32, #tpu.memory_space<vmem>>, %arg10: memref<33x64xf32, #tpu.memory_space<vmem>>, %arg11: memref<65x32xf32, #tpu.memory_space<vmem>>, %arg12: memref<1x8x32xf32, #tpu.memory_space<vmem>>, %arg13: memref<1x8x8xf32, #tpu.memory_space<vmem>>) attributes {dimension_semantics = [#tpu.dimension_semantics<parallel>, #tpu.dimension_semantics<parallel>], iteration_bounds = array<i64: 2, 1>, scalar_prefetch = 0 : i64, scratch_operands = 0 : i64, tpu.core_type = #tpu.core_type<tc>, window_params = [{transform_indices = @transform_0, window_bounds = array<i64: 1, 8, 32>}, {transform_indices = @transform_1, window_bounds = array<i64: 1, 8, 32>}, {transform_indices = @transform_2, window_bounds = array<i64: 1, 32, 8>}, {pipeline_mode = #tpu.pipeline_mode<synchronous>, transform_indices = @transform_3, window_bounds = array<i64: 33, 4>}, {pipeline_mode = #tpu.pipeline_mode<synchronous>, transform_indices = @transform_4, window_bounds = array<i64: 4, 33>}, {pipeline_mode = #tpu.pipeline_mode<synchronous>, transform_indices = @transform_5, window_bounds = array<i64: 33, 32>}, {pipeline_mode = #tpu.pipeline_mode<synchronous>, transform_indices = @transform_6, window_bounds = array<i64: 16, 16>}, {pipeline_mode = #tpu.pipeline_mode<synchronous>, transform_indices = @transform_7, window_bounds = array<i64: 6, 32>}, {pipeline_mode = #tpu.pipeline_mode<synchronous>, transform_indices = @transform_8, window_bounds = array<i64: 33, 64>}, {pipeline_mode = #tpu.pipeline_mode<synchronous>, transform_indices = @transform_9, window_bounds = array<i64: 65, 32>}, {transform_indices = @transform_10, window_bounds = array<i64: 1, 8, 32>}, {transform_indices = @transform_11, window_bounds = array<i64: 1, 8, 8>}]} {
    %c0 = arith.constant 0 : index
    %c0_0 = arith.constant 0 : index
    %c0_1 = arith.constant 0 : index
    %0 = vector.load %arg2[%c0, %c0_0, %c0_1] : memref<1x8x32xf32, #tpu.memory_space<vmem>>, vector<1x8x32xf32>
    %1 = vector.shape_cast %0 : vector<1x8x32xf32> to vector<8x32xf32>
    %c0_2 = arith.constant 0 : index
    %c0_3 = arith.constant 0 : index
    %c0_4 = arith.constant 0 : index
    %2 = vector.load %arg3[%c0_2, %c0_3, %c0_4] : memref<1x8x32xf32, #tpu.memory_space<vmem>>, vector<1x8x32xf32>
    %3 = vector.shape_cast %2 : vector<1x8x32xf32> to vector<8x32xf32>
    %c0_5 = arith.constant 0 : index
    %c0_6 = arith.constant 0 : index
    %c0_7 = arith.constant 0 : index
    %4 = vector.load %arg4[%c0_5, %c0_6, %c0_7] : memref<1x32x8xf32, #tpu.memory_space<vmem>>, vector<1x32x8xf32>
    %5 = vector.shape_cast %4 : vector<1x32x8xf32> to vector<32x8xf32>
    %c0_8 = arith.constant 0 : index
    %c0_9 = arith.constant 0 : index
    %6 = vector.load %arg5[%c0_8, %c0_9] : memref<33x4xf32, #tpu.memory_space<vmem>>, vector<32x4xf32>
    %cst = arith.constant dense<0.000000e+00> : vector<8x4xf32>
    %7 = tpu.matmul %1, %6, %cst {dimension_numbers = #tpu.dot_dimension_numbers<[1], [0], [0], [1], [0, 0, 1, 1], [], []>} : vector<8x32xf32>, vector<32x4xf32>, vector<8x4xf32> -> vector<8x4xf32>
    %c32 = arith.constant 32 : index
    %c0_10 = arith.constant 0 : index
    %8 = vector.load %arg5[%c32, %c0_10] : memref<33x4xf32, #tpu.memory_space<vmem>>, vector<1x4xf32>
    %9 = vector.broadcast %8 : vector<1x4xf32> to vector<8x4xf32>
    %10 = arith.addf %7, %9 : vector<8x4xf32>
    %11 = math.tanh %10 : vector<8x4xf32>
    %c0_11 = arith.constant 0 : index
    %c0_12 = arith.constant 0 : index
    %12 = vector.load %arg6[%c0_11, %c0_12] : memref<4x33xf32, #tpu.memory_space<vmem>>, vector<4x32xf32>
    %cst_13 = arith.constant dense<0.000000e+00> : vector<4x8xf32>
    %13 = tpu.matmul %12, %5, %cst_13 {dimension_numbers = #tpu.dot_dimension_numbers<[1], [0], [0], [1], [0, 0, 1, 1], [], []>} : vector<4x32xf32>, vector<32x8xf32>, vector<4x8xf32> -> vector<4x8xf32>
    %c0_14 = arith.constant 0 : index
    %c32_15 = arith.constant 32 : index
    %14 = vector.load %arg6[%c0_14, %c32_15] : memref<4x33xf32, #tpu.memory_space<vmem>>, vector<4x1xf32>
    %15 = vector.broadcast %14 : vector<4x1xf32> to vector<4x8xf32>
    %16 = arith.addf %13, %15 : vector<4x8xf32>
    %17 = math.tanh %16 : vector<4x8xf32>
    %18 = vector.shape_cast %11 : vector<8x4xf32> to vector<8x4x1xf32>
    %19 = vector.shape_cast %17 : vector<4x8xf32> to vector<1x4x8xf32>
    %20 = vector.broadcast %18 : vector<8x4x1xf32> to vector<8x4x8xf32>
    %21 = vector.broadcast %19 : vector<1x4x8xf32> to vector<8x4x8xf32>
    %22 = arith.addf %20, %21 : vector<8x4x8xf32>
    %23 = math.tanh %22 : vector<8x4x8xf32>
    %cst_16 = arith.constant 5.000000e-01 : f32
    %24 = vector.broadcast %cst_16 : f32 to vector<8x4x8xf32>
    %25 = arith.mulf %24, %23 : vector<8x4x8xf32>
    %26 = arith.mulf %25, %25 : vector<8x4x8xf32>
    %cst_17 = arith.constant 2.48015876E-5 : f32
    %27 = vector.broadcast %cst_17 : f32 to vector<8x4x8xf32>
    %28 = arith.mulf %26, %27 : vector<8x4x8xf32>
    %cst_18 = arith.constant -0.00138888892 : f32
    %29 = vector.broadcast %cst_18 : f32 to vector<8x4x8xf32>
    %30 = arith.addf %29, %28 : vector<8x4x8xf32>
    %31 = arith.mulf %26, %30 : vector<8x4x8xf32>
    %cst_19 = arith.constant 0.0416666679 : f32
    %32 = vector.broadcast %cst_19 : f32 to vector<8x4x8xf32>
    %33 = arith.addf %32, %31 : vector<8x4x8xf32>
    %34 = arith.mulf %26, %33 : vector<8x4x8xf32>
    %cst_20 = arith.constant -5.000000e-01 : f32
    %35 = vector.broadcast %cst_20 : f32 to vector<8x4x8xf32>
    %36 = arith.addf %35, %34 : vector<8x4x8xf32>
    %37 = arith.mulf %26, %36 : vector<8x4x8xf32>
    %cst_21 = arith.constant 1.000000e+00 : f32
    %38 = vector.broadcast %cst_21 : f32 to vector<8x4x8xf32>
    %39 = arith.addf %38, %37 : vector<8x4x8xf32>
    %40 = arith.mulf %25, %25 : vector<8x4x8xf32>
    %cst_22 = arith.constant 2.75573188E-6 : f32
    %41 = vector.broadcast %cst_22 : f32 to vector<8x4x8xf32>
    %42 = arith.mulf %40, %41 : vector<8x4x8xf32>
    %cst_23 = arith.constant -1.98412701E-4 : f32
    %43 = vector.broadcast %cst_23 : f32 to vector<8x4x8xf32>
    %44 = arith.addf %43, %42 : vector<8x4x8xf32>
    %45 = arith.mulf %40, %44 : vector<8x4x8xf32>
    %cst_24 = arith.constant 0.00833333377 : f32
    %46 = vector.broadcast %cst_24 : f32 to vector<8x4x8xf32>
    %47 = arith.addf %46, %45 : vector<8x4x8xf32>
    %48 = arith.mulf %40, %47 : vector<8x4x8xf32>
    %cst_25 = arith.constant -0.166666672 : f32
    %49 = vector.broadcast %cst_25 : f32 to vector<8x4x8xf32>
    %50 = arith.addf %49, %48 : vector<8x4x8xf32>
    %51 = arith.mulf %40, %50 : vector<8x4x8xf32>
    %cst_26 = arith.constant 1.000000e+00 : f32
    %52 = vector.broadcast %cst_26 : f32 to vector<8x4x8xf32>
    %53 = arith.addf %52, %51 : vector<8x4x8xf32>
    %54 = arith.mulf %25, %53 : vector<8x4x8xf32>
    %55 = vector.extract_strided_slice %39 {offsets = [0, 0, 0], sizes = [8, 1, 8], strides = [1, 1, 1]} : vector<8x4x8xf32> to vector<8x1x8xf32>
    %56 = vector.extract_strided_slice %54 {offsets = [0, 0, 0], sizes = [8, 1, 8], strides = [1, 1, 1]} : vector<8x4x8xf32> to vector<8x1x8xf32>
    %57 = vector.extract_strided_slice %39 {offsets = [0, 1, 0], sizes = [8, 1, 8], strides = [1, 1, 1]} : vector<8x4x8xf32> to vector<8x1x8xf32>
    %58 = vector.extract_strided_slice %54 {offsets = [0, 1, 0], sizes = [8, 1, 8], strides = [1, 1, 1]} : vector<8x4x8xf32> to vector<8x1x8xf32>
    %59 = vector.extract_strided_slice %39 {offsets = [0, 2, 0], sizes = [8, 1, 8], strides = [1, 1, 1]} : vector<8x4x8xf32> to vector<8x1x8xf32>
    %60 = vector.extract_strided_slice %54 {offsets = [0, 2, 0], sizes = [8, 1, 8], strides = [1, 1, 1]} : vector<8x4x8xf32> to vector<8x1x8xf32>
    %61 = vector.extract_strided_slice %39 {offsets = [0, 3, 0], sizes = [8, 1, 8], strides = [1, 1, 1]} : vector<8x4x8xf32> to vector<8x1x8xf32>
    %62 = vector.extract_strided_slice %54 {offsets = [0, 3, 0], sizes = [8, 1, 8], strides = [1, 1, 1]} : vector<8x4x8xf32> to vector<8x1x8xf32>
    %63 = arith.mulf %55, %57 : vector<8x1x8xf32>
    %64 = arith.mulf %56, %57 : vector<8x1x8xf32>
    %65 = arith.mulf %55, %58 : vector<8x1x8xf32>
    %66 = arith.mulf %56, %58 : vector<8x1x8xf32>
    %67 = tpu.concatenate %63, %64, %65, %66 in 1 : vector<8x1x8xf32>, vector<8x1x8xf32>, vector<8x1x8xf32>, vector<8x1x8xf32> -> vector<8x4x8xf32>
    %68 = arith.mulf %59, %61 : vector<8x1x8xf32>
    %69 = arith.mulf %60, %61 : vector<8x1x8xf32>
    %70 = arith.mulf %59, %62 : vector<8x1x8xf32>
    %71 = arith.mulf %60, %62 : vector<8x1x8xf32>
    %72 = tpu.concatenate %68, %69, %70, %71 in 1 : vector<8x1x8xf32>, vector<8x1x8xf32>, vector<8x1x8xf32>, vector<8x1x8xf32> -> vector<8x4x8xf32>
    %73 = vector.extract_strided_slice %72 {offsets = [0, 0, 0], sizes = [8, 1, 8], strides = [1, 1, 1]} : vector<8x4x8xf32> to vector<8x1x8xf32>
    %74 = vector.broadcast %73 : vector<8x1x8xf32> to vector<8x4x8xf32>
    %75 = arith.mulf %67, %74 : vector<8x4x8xf32>
    %76 = vector.extract_strided_slice %72 {offsets = [0, 1, 0], sizes = [8, 1, 8], strides = [1, 1, 1]} : vector<8x4x8xf32> to vector<8x1x8xf32>
    %77 = vector.broadcast %76 : vector<8x1x8xf32> to vector<8x4x8xf32>
    %78 = arith.mulf %67, %77 : vector<8x4x8xf32>
    %79 = vector.extract_strided_slice %72 {offsets = [0, 2, 0], sizes = [8, 1, 8], strides = [1, 1, 1]} : vector<8x4x8xf32> to vector<8x1x8xf32>
    %80 = vector.broadcast %79 : vector<8x1x8xf32> to vector<8x4x8xf32>
    %81 = arith.mulf %67, %80 : vector<8x4x8xf32>
    %82 = vector.extract_strided_slice %72 {offsets = [0, 3, 0], sizes = [8, 1, 8], strides = [1, 1, 1]} : vector<8x4x8xf32> to vector<8x1x8xf32>
    %83 = vector.broadcast %82 : vector<8x1x8xf32> to vector<8x4x8xf32>
    %84 = arith.mulf %67, %83 : vector<8x4x8xf32>
    %85 = tpu.concatenate %75, %78, %81, %84 in 1 : vector<8x4x8xf32>, vector<8x4x8xf32>, vector<8x4x8xf32>, vector<8x4x8xf32> -> vector<8x16x8xf32>
    %c0_27 = arith.constant 0 : index
    %c0_28 = arith.constant 0 : index
    %86 = vector.load %arg8[%c0_27, %c0_28] : memref<16x16xf32, #tpu.memory_space<vmem>>, vector<16x16xf32>
    %87 = vector.shape_cast %86 : vector<16x16xf32> to vector<1x16x16xf32>
    %88 = vector.shape_cast %87 : vector<1x16x16xf32> to vector<1x16x16xf32>
    %89 = vector.broadcast %88 : vector<1x16x16xf32> to vector<8x16x16xf32>
    "tpu.trace_start"() <{level = 10 : i32, message = "iab,ibs->ias"}> : () -> ()
    %cst_29 = arith.constant dense<0.000000e+00> : vector<8x16x8xf32>
    %90 = tpu.matmul %89, %85, %cst_29 {dimension_numbers = #tpu.dot_dimension_numbers<[2], [1], [1], [2], [0, 0, 0, 1, 1, 2], [0], [0]>} : vector<8x16x16xf32>, vector<8x16x8xf32>, vector<8x16x8xf32> -> vector<8x16x8xf32>
    "tpu.trace_stop"() : () -> ()
    %91 = arith.mulf %85, %90 : vector<8x16x8xf32>
    %cst_30 = arith.constant dense<0.000000e+00> : vector<8x8xf32>
    %92 = vector.multi_reduction <add>, %91, %cst_30 [1] : vector<8x16x8xf32> to vector<8x8xf32>
    %cst_31 = arith.constant 5.000000e-01 : f32
    %93 = vector.broadcast %cst_31 : f32 to vector<8x8xf32>
    %94 = arith.mulf %92, %93 : vector<8x8xf32>
    %cst_32 = arith.constant dense<0xFF800000> : vector<8xf32>
    %95 = vector.multi_reduction <maximumf>, %94, %cst_32 [1] : vector<8x8xf32> to vector<8xf32>
    %96 = vector.shape_cast %95 : vector<8xf32> to vector<8x1xf32>
    %97 = vector.broadcast %96 : vector<8x1xf32> to vector<8x8xf32>
    %98 = arith.subf %94, %97 : vector<8x8xf32>
    %99 = math.exp %98 : vector<8x8xf32>
    %cst_33 = arith.constant dense<0.000000e+00> : vector<8xf32>
    %100 = vector.multi_reduction <add>, %99, %cst_33 [1] : vector<8x8xf32> to vector<8xf32>
    %101 = vector.shape_cast %100 : vector<8xf32> to vector<8x1xf32>
    %102 = tpu.reciprocal %101 {approx = true} : vector<8x1xf32> -> vector<8x1xf32>
    %103 = arith.mulf %101, %102 : vector<8x1xf32>
    %cst_34 = arith.constant 2.000000e+00 : f32
    %104 = vector.broadcast %cst_34 : f32 to vector<8x1xf32>
    %105 = arith.subf %104, %103 : vector<8x1xf32>
    %106 = arith.mulf %102, %105 : vector<8x1xf32>
    %107 = vector.broadcast %106 : vector<8x1xf32> to vector<8x8xf32>
    %108 = arith.mulf %99, %107 : vector<8x8xf32>
    %c0_35 = arith.constant 0 : index
    %c0_36 = arith.constant 0 : index
    %109 = vector.load %arg7[%c0_35, %c0_36] : memref<33x32xf32, #tpu.memory_space<vmem>>, vector<32x32xf32>
    %cst_37 = arith.constant dense<0.000000e+00> : vector<8x32xf32>
    %110 = tpu.matmul %3, %109, %cst_37 {dimension_numbers = #tpu.dot_dimension_numbers<[1], [0], [0], [1], [0, 0, 1, 1], [], []>} : vector<8x32xf32>, vector<32x32xf32>, vector<8x32xf32> -> vector<8x32xf32>
    %cst_38 = arith.constant dense<0.000000e+00> : vector<8x32xf32>
    %111 = tpu.matmul %108, %110, %cst_38 {dimension_numbers = #tpu.dot_dimension_numbers<[1], [0], [0], [1], [0, 0, 1, 1], [], []>} : vector<8x8xf32>, vector<8x32xf32>, vector<8x32xf32> -> vector<8x32xf32>
    %c32_39 = arith.constant 32 : index
    %c0_40 = arith.constant 0 : index
    %112 = vector.load %arg7[%c32_39, %c0_40] : memref<33x32xf32, #tpu.memory_space<vmem>>, vector<1x32xf32>
    %113 = vector.broadcast %112 : vector<1x32xf32> to vector<8x32xf32>
    %114 = arith.addf %111, %113 : vector<8x32xf32>
    %115 = arith.addf %1, %114 : vector<8x32xf32>
    %c0_41 = arith.constant 0 : index
    %c0_42 = arith.constant 0 : index
    %116 = vector.load %arg9[%c0_41, %c0_42] : memref<6x32xf32, #tpu.memory_space<vmem>>, vector<1x32xf32>
    %c1 = arith.constant 1 : index
    %c0_43 = arith.constant 0 : index
    %117 = vector.load %arg9[%c1, %c0_43] : memref<6x32xf32, #tpu.memory_space<vmem>>, vector<1x32xf32>
    %cst_44 = arith.constant dense<0.000000e+00> : vector<8xf32>
    %118 = vector.multi_reduction <add>, %115, %cst_44 [1] : vector<8x32xf32> to vector<8xf32>
    %119 = vector.shape_cast %118 : vector<8xf32> to vector<8x1xf32>
    %cst_45 = arith.constant 3.200000e+01 : f32
    %120 = vector.broadcast %cst_45 : f32 to vector<8x1xf32>
    %121 = arith.divf %119, %120 : vector<8x1xf32>
    %122 = vector.broadcast %121 : vector<8x1xf32> to vector<8x32xf32>
    %123 = arith.subf %115, %122 : vector<8x32xf32>
    %124 = arith.mulf %123, %123 : vector<8x32xf32>
    %cst_46 = arith.constant dense<0.000000e+00> : vector<8xf32>
    %125 = vector.multi_reduction <add>, %124, %cst_46 [1] : vector<8x32xf32> to vector<8xf32>
    %126 = vector.shape_cast %125 : vector<8xf32> to vector<8x1xf32>
    %cst_47 = arith.constant 3.200000e+01 : f32
    %127 = vector.broadcast %cst_47 : f32 to vector<8x1xf32>
    %128 = arith.divf %126, %127 : vector<8x1xf32>
    %129 = vector.broadcast %121 : vector<8x1xf32> to vector<8x32xf32>
    %130 = arith.subf %115, %129 : vector<8x32xf32>
    %cst_48 = arith.constant 9.99999974E-6 : f32
    %131 = vector.broadcast %cst_48 : f32 to vector<8x1xf32>
    %132 = arith.addf %128, %131 : vector<8x1xf32>
    %133 = math.rsqrt %132 : vector<8x1xf32>
    %134 = vector.broadcast %133 : vector<8x1xf32> to vector<8x32xf32>
    %135 = arith.mulf %130, %134 : vector<8x32xf32>
    %136 = vector.broadcast %116 : vector<1x32xf32> to vector<8x32xf32>
    %137 = arith.mulf %135, %136 : vector<8x32xf32>
    %138 = vector.broadcast %117 : vector<1x32xf32> to vector<8x32xf32>
    %139 = arith.addf %137, %138 : vector<8x32xf32>
    %c0_49 = arith.constant 0 : index
    %c0_50 = arith.constant 0 : index
    %140 = vector.load %arg10[%c0_49, %c0_50] : memref<33x64xf32, #tpu.memory_space<vmem>>, vector<32x64xf32>
    %cst_51 = arith.constant dense<0.000000e+00> : vector<8x64xf32>
    %141 = tpu.matmul %139, %140, %cst_51 {dimension_numbers = #tpu.dot_dimension_numbers<[1], [0], [0], [1], [0, 0, 1, 1], [], []>} : vector<8x32xf32>, vector<32x64xf32>, vector<8x64xf32> -> vector<8x64xf32>
    %c32_52 = arith.constant 32 : index
    %c0_53 = arith.constant 0 : index
    %142 = vector.load %arg10[%c32_52, %c0_53] : memref<33x64xf32, #tpu.memory_space<vmem>>, vector<1x64xf32>
    %143 = vector.broadcast %142 : vector<1x64xf32> to vector<8x64xf32>
    %144 = arith.addf %141, %143 : vector<8x64xf32>
    %cst_54 = arith.constant 5.000000e-01 : f32
    %145 = vector.broadcast %cst_54 : f32 to vector<8x64xf32>
    %146 = arith.mulf %145, %144 : vector<8x64xf32>
    %cst_55 = arith.constant 0.707106769 : f32
    %147 = vector.broadcast %cst_55 : f32 to vector<8x64xf32>
    %148 = arith.mulf %144, %147 : vector<8x64xf32>
    %149 = math.erf %148 : vector<8x64xf32>
    %cst_56 = arith.constant 1.000000e+00 : f32
    %150 = vector.broadcast %cst_56 : f32 to vector<8x64xf32>
    %151 = arith.addf %150, %149 : vector<8x64xf32>
    %152 = arith.mulf %146, %151 : vector<8x64xf32>
    %c0_57 = arith.constant 0 : index
    %c0_58 = arith.constant 0 : index
    %153 = vector.load %arg11[%c0_57, %c0_58] : memref<65x32xf32, #tpu.memory_space<vmem>>, vector<64x32xf32>
    %cst_59 = arith.constant dense<0.000000e+00> : vector<8x32xf32>
    %154 = tpu.matmul %152, %153, %cst_59 {dimension_numbers = #tpu.dot_dimension_numbers<[1], [0], [0], [1], [0, 0, 1, 1], [], []>} : vector<8x64xf32>, vector<64x32xf32>, vector<8x32xf32> -> vector<8x32xf32>
    %c64 = arith.constant 64 : index
    %c0_60 = arith.constant 0 : index
    %155 = vector.load %arg11[%c64, %c0_60] : memref<65x32xf32, #tpu.memory_space<vmem>>, vector<1x32xf32>
    %156 = vector.broadcast %155 : vector<1x32xf32> to vector<8x32xf32>
    %157 = arith.addf %154, %156 : vector<8x32xf32>
    %158 = arith.addf %157, %139 : vector<8x32xf32>
    %c2 = arith.constant 2 : index
    %c0_61 = arith.constant 0 : index
    %159 = vector.load %arg9[%c2, %c0_61] : memref<6x32xf32, #tpu.memory_space<vmem>>, vector<1x32xf32>
    %c3 = arith.constant 3 : index
    %c0_62 = arith.constant 0 : index
    %160 = vector.load %arg9[%c3, %c0_62] : memref<6x32xf32, #tpu.memory_space<vmem>>, vector<1x32xf32>
    %cst_63 = arith.constant dense<0.000000e+00> : vector<8xf32>
    %161 = vector.multi_reduction <add>, %158, %cst_63 [1] : vector<8x32xf32> to vector<8xf32>
    %162 = vector.shape_cast %161 : vector<8xf32> to vector<8x1xf32>
    %cst_64 = arith.constant 3.200000e+01 : f32
    %163 = vector.broadcast %cst_64 : f32 to vector<8x1xf32>
    %164 = arith.divf %162, %163 : vector<8x1xf32>
    %165 = vector.broadcast %164 : vector<8x1xf32> to vector<8x32xf32>
    %166 = arith.subf %158, %165 : vector<8x32xf32>
    %167 = arith.mulf %166, %166 : vector<8x32xf32>
    %cst_65 = arith.constant dense<0.000000e+00> : vector<8xf32>
    %168 = vector.multi_reduction <add>, %167, %cst_65 [1] : vector<8x32xf32> to vector<8xf32>
    %169 = vector.shape_cast %168 : vector<8xf32> to vector<8x1xf32>
    %cst_66 = arith.constant 3.200000e+01 : f32
    %170 = vector.broadcast %cst_66 : f32 to vector<8x1xf32>
    %171 = arith.divf %169, %170 : vector<8x1xf32>
    %172 = vector.broadcast %164 : vector<8x1xf32> to vector<8x32xf32>
    %173 = arith.subf %158, %172 : vector<8x32xf32>
    %cst_67 = arith.constant 9.99999974E-6 : f32
    %174 = vector.broadcast %cst_67 : f32 to vector<8x1xf32>
    %175 = arith.addf %171, %174 : vector<8x1xf32>
    %176 = math.rsqrt %175 : vector<8x1xf32>
    %177 = vector.broadcast %176 : vector<8x1xf32> to vector<8x32xf32>
    %178 = arith.mulf %173, %177 : vector<8x32xf32>
    %179 = vector.broadcast %159 : vector<1x32xf32> to vector<8x32xf32>
    %180 = arith.mulf %178, %179 : vector<8x32xf32>
    %181 = vector.broadcast %160 : vector<1x32xf32> to vector<8x32xf32>
    %182 = arith.addf %180, %181 : vector<8x32xf32>
    %183 = arith.addf %139, %182 : vector<8x32xf32>
    %c4 = arith.constant 4 : index
    %c0_68 = arith.constant 0 : index
    %184 = vector.load %arg9[%c4, %c0_68] : memref<6x32xf32, #tpu.memory_space<vmem>>, vector<1x32xf32>
    %c5 = arith.constant 5 : index
    %c0_69 = arith.constant 0 : index
    %185 = vector.load %arg9[%c5, %c0_69] : memref<6x32xf32, #tpu.memory_space<vmem>>, vector<1x32xf32>
    %cst_70 = arith.constant dense<0.000000e+00> : vector<8xf32>
    %186 = vector.multi_reduction <add>, %183, %cst_70 [1] : vector<8x32xf32> to vector<8xf32>
    %187 = vector.shape_cast %186 : vector<8xf32> to vector<8x1xf32>
    %cst_71 = arith.constant 3.200000e+01 : f32
    %188 = vector.broadcast %cst_71 : f32 to vector<8x1xf32>
    %189 = arith.divf %187, %188 : vector<8x1xf32>
    %190 = vector.broadcast %189 : vector<8x1xf32> to vector<8x32xf32>
    %191 = arith.subf %183, %190 : vector<8x32xf32>
    %192 = arith.mulf %191, %191 : vector<8x32xf32>
    %cst_72 = arith.constant dense<0.000000e+00> : vector<8xf32>
    %193 = vector.multi_reduction <add>, %192, %cst_72 [1] : vector<8x32xf32> to vector<8xf32>
    %194 = vector.shape_cast %193 : vector<8xf32> to vector<8x1xf32>
    %cst_73 = arith.constant 3.200000e+01 : f32
    %195 = vector.broadcast %cst_73 : f32 to vector<8x1xf32>
    %196 = arith.divf %194, %195 : vector<8x1xf32>
    %197 = vector.broadcast %189 : vector<8x1xf32> to vector<8x32xf32>
    %198 = arith.subf %183, %197 : vector<8x32xf32>
    %cst_74 = arith.constant 9.99999974E-6 : f32
    %199 = vector.broadcast %cst_74 : f32 to vector<8x1xf32>
    %200 = arith.addf %196, %199 : vector<8x1xf32>
    %201 = math.rsqrt %200 : vector<8x1xf32>
    %202 = vector.broadcast %201 : vector<8x1xf32> to vector<8x32xf32>
    %203 = arith.mulf %198, %202 : vector<8x32xf32>
    %204 = vector.broadcast %184 : vector<1x32xf32> to vector<8x32xf32>
    %205 = arith.mulf %203, %204 : vector<8x32xf32>
    %206 = vector.broadcast %185 : vector<1x32xf32> to vector<8x32xf32>
    %207 = arith.addf %205, %206 : vector<8x32xf32>
    %c0_75 = arith.constant 0 : index
    %c0_76 = arith.constant 0 : index
    %c0_77 = arith.constant 0 : index
    %208 = vector.load %arg12[%c0_75, %c0_76, %c0_77] : memref<1x8x32xf32, #tpu.memory_space<vmem>>, vector<1x8x32xf32>
    %209 = vector.shape_cast %208 : vector<1x8x32xf32> to vector<8x32xf32>
    %210 = vector.shape_cast %207 : vector<8x32xf32> to vector<1x8x32xf32>
    tpu.vector_store %arg12[%c0_75, %c0_76, %c0_77], %210 {strides = array<i32>} : memref<1x8x32xf32, #tpu.memory_space<vmem>>, vector<1x8x32xf32>,
    %c0_78 = arith.constant 0 : index
    %c0_79 = arith.constant 0 : index
    %c0_80 = arith.constant 0 : index
    %211 = vector.load %arg13[%c0_78, %c0_79, %c0_80] : memref<1x8x8xf32, #tpu.memory_space<vmem>>, vector<1x8x8xf32>
    %212 = vector.shape_cast %211 : vector<1x8x8xf32> to vector<8x8xf32>
    %213 = vector.shape_cast %108 : vector<8x8xf32> to vector<1x8x8xf32>
    tpu.vector_store %arg13[%c0_78, %c0_79, %c0_80], %213 {strides = array<i32>} : memref<1x8x8xf32, #tpu.memory_space<vmem>>, vector<1x8x8xf32>,
    return
  }
  func.func @transform_0(%arg0: i32, %arg1: i32) -> (i32, i32, i32) {
    %c0_i32 = arith.constant 0 : i32
    %c0_i32_0 = arith.constant 0 : i32
    return %arg0, %arg1, %c0_i32 : i32, i32, i32
  }
  func.func @transform_1(%arg0: i32, %arg1: i32) -> (i32, i32, i32) {
    %c0_i32 = arith.constant 0 : i32
    %c0_i32_0 = arith.constant 0 : i32
    %c0_i32_1 = arith.constant 0 : i32
    return %arg0, %c0_i32, %c0_i32_0 : i32, i32, i32
  }
  func.func @transform_2(%arg0: i32, %arg1: i32) -> (i32, i32, i32) {
    %c0_i32 = arith.constant 0 : i32
    %c0_i32_0 = arith.constant 0 : i32
    %c0_i32_1 = arith.constant 0 : i32
    return %arg0, %c0_i32, %c0_i32_0 : i32, i32, i32
  }
  func.func @transform_3(%arg0: i32, %arg1: i32) -> (i32, i32) {
    %c0_i32 = arith.constant 0 : i32
    %c0_i32_0 = arith.constant 0 : i32
    %c0_i32_1 = arith.constant 0 : i32
    return %c0_i32, %c0_i32_0 : i32, i32
  }
  func.func @transform_4(%arg0: i32, %arg1: i32) -> (i32, i32) {
    %c0_i32 = arith.constant 0 : i32
    %c0_i32_0 = arith.constant 0 : i32
    %c0_i32_1 = arith.constant 0 : i32
    return %c0_i32, %c0_i32_0 : i32, i32
  }
  func.func @transform_5(%arg0: i32, %arg1: i32) -> (i32, i32) {
    %c0_i32 = arith.constant 0 : i32
    %c0_i32_0 = arith.constant 0 : i32
    %c0_i32_1 = arith.constant 0 : i32
    return %c0_i32, %c0_i32_0 : i32, i32
  }
  func.func @transform_6(%arg0: i32, %arg1: i32) -> (i32, i32) {
    %c0_i32 = arith.constant 0 : i32
    %c0_i32_0 = arith.constant 0 : i32
    %c0_i32_1 = arith.constant 0 : i32
    return %c0_i32, %c0_i32_0 : i32, i32
  }
  func.func @transform_7(%arg0: i32, %arg1: i32) -> (i32, i32) {
    %c0_i32 = arith.constant 0 : i32
    %c0_i32_0 = arith.constant 0 : i32
    %c0_i32_1 = arith.constant 0 : i32
    return %c0_i32, %c0_i32_0 : i32, i32
  }
  func.func @transform_8(%arg0: i32, %arg1: i32) -> (i32, i32) {
    %c0_i32 = arith.constant 0 : i32
    %c0_i32_0 = arith.constant 0 : i32
    %c0_i32_1 = arith.constant 0 : i32
    return %c0_i32, %c0_i32_0 : i32, i32
  }
  func.func @transform_9(%arg0: i32, %arg1: i32) -> (i32, i32) {
    %c0_i32 = arith.constant 0 : i32
    %c0_i32_0 = arith.constant 0 : i32
    %c0_i32_1 = arith.constant 0 : i32
    return %c0_i32, %c0_i32_0 : i32, i32
  }
  func.func @transform_10(%arg0: i32, %arg1: i32) -> (i32, i32, i32) {
    %c0_i32 = arith.constant 0 : i32
    %c0_i32_0 = arith.constant 0 : i32
    return %arg0, %arg1, %c0_i32 : i32, i32, i32
  }
  func.func @transform_11(%arg0: i32, %arg1: i32) -> (i32, i32, i32) {
    %c0_i32 = arith.constant 0 : i32
    %c0_i32_0 = arith.constant 0 : i32
    return %arg0, %arg1, %c0_i32 : i32, i32, i32
  }
}

</mosaic_0001>

<bundles_post_ra>
// kernel: hybrid_transformer_block.1
= control target key start
LH: loop header
LB: loop body
LE: loop exit
PB: predicated region body
PF: predicated region fallthrough
CT: control target
= control target key end

     0   :  { %s4155_s0 = inlined_call_operand.vmem [shape: f32[2,8,32], index: 0, kind: input, shape index: {}, may-alias: {0,1}]   ;;  %s4156_s1 = inlined_call_operand.vmem [shape: f32[2,8,32], index: 1, kind: input, shape index: {}, may-alias: {0,1}]   ;;  %s4157_s2 = inlined_call_operand.vmem [shape: f32[2,32,8], index: 2, kind: input, shape index: {}]   ;;  %s4158_s3 = inlined_call_operand.vmem [shape: f32[33,4], index: 3, kind: input, shape index: {}]   ;;  %s4159_s4 = inlined_call_operand.vmem [shape: f32[4,33], index: 4, kind: input, shape index: {}]   ;;  %s4160_s5 = inlined_call_operand.vmem [shape: f32[33,32], index: 5, kind: input, shape index: {}]   ;;  %s4161_s6 = inlined_call_operand.vmem [shape: f32[16,16], index: 6, kind: input, shape index: {}]   ;;  %s4162_s7 = inlined_call_operand.vmem [shape: f32[6,32], index: 7, kind: input, shape index: {}]   ;;  %s4163_s8 = inlined_call_operand.vmem [shape: f32[33,64], index: 8, kind: input, shape index: {}]   ;;  %s4164_s9 = inlined_call_operand.vmem [shape: f32[65,32], index: 9, kind: input, shape index: {}]   ;;  %s4165_s10 = inlined_call_operand.hbm [shape: f32[2,8,32], index: 10, kind: output, shape index: {0}]   ;;  %s4166_s11 = inlined_call_operand.hbm [shape: f32[2,8,8], index: 11, kind: output, shape index: {1}]  }
   0x1   :  { %4173 = sst [smem:[#allocation8_spill]] %s4155_s0 }
   0x2   :  { %4174 = sst [smem:[#allocation9_spill]] %s4157_s2 }
   0x3   :  { %4175 = sst [smem:[#allocation10_spill]] %s4158_s3 }
   0x4   :  { %4176 = sst [smem:[#allocation11_spill]] %s4159_s4 }
   0x5   :  { %17 = vsyncpa [#allocation3], 0 }
   0x6   :  { %19 = vsyncpa [#allocation3 + $0x1], 0 }
   0x7   :  { %20 = vsyncpa [#allocation5], 0 }
   0x8   :  { %22 = vsyncpa [#allocation5 + $0x1], 0  ;;  %s3349_s17 = smov 0   ;;  %s3351_s18 = smov 0  }
   0x9   :  { %s3353_s19 = smov 0   ;;  %s3355_s20 = smov 0  }
   0xa   :  { %s3357_s21 = smov 0   ;;  %s3359_s22 = smov 0  }
   0xb LB: > { %s2754_s23 = sadd.s32 4294967295, %s3281_s22   ;;  %s2755_s24 = sadd.s32 4294967294, %s3281_s22   ;;  %s3281_s22 = sphi %s3359_s22, %s28_s22   ;;  %s3277_s21 = sphi %s3357_s21, %s4195_s21   ;;  %s3273_s20 = sphi %s3355_s20, %s4194_s20   ;;  %s3269_s19 = sphi %s3353_s19, %s4193_s19   ;;  %s3265_s18 = sphi %s3351_s18, %s4192_s18   ;;  %s3261_s17 = sphi %s3349_s17, %s4191_s17  }
   0xc   : > { %s40_s25 = sadd.s32 1, %s3277_s21  ;;  %s276_s26 = sadd.s32 1, %s3269_s19 }
   0xd   : > { %p42_p0 = scmp.ge.s32.totalorder %s40_s25, 2  ;;  %p286_p1 = scmp.ne.s32.totalorder %s3269_s19, %s3265_s18 }
   0xe   : > { %p287_p2 = scmp.eq.s32.totalorder %s2754_s23, 1  ;;  %p292_p3 = scmp.ne.s32.totalorder %s3265_s18, %s3261_s17 }
   0xf   : > { %s4197_s25 = smov (%p42_p0, %s40_s25), 0  ;;  %p293_p5 = scmp.eq.s32.totalorder %s2755_s24, 1 }
  0x10   : > { %p3389_p4 = por %p287_p2, %p286_p1  ;;  %s271_s28 = ssub.s32 %s3277_s21, %s4197_s25 }
  0x11   : > { %p2758_p6 = scmp.ge.s32.totalorder %s3281_s22, 1  ;;  %p274_p7 = scmp.eq.s32.totalorder %s271_s28, 0 }
  0x12   : > { %p3396_p8 = por %p293_p5, %p292_p3  ;;  %p385_p9 = scmp.lt.s32.totalorder %s3281_s22, 3 }
  0x13   : > { %s3402_s30 = scalar_select %p274_p7, %s3269_s19, %s276_s26  }
  0x14   : > { %p386_p10 = pnand %p2758_p6, %p385_p9 }
  0x15   : > { %s4179_s3 = sld [smem:[#allocation10_spill]] (!%p386_p10)  ;;  %v4169_v3 = vmov (!%p386_p10), 0.0|0.0   ;;  %vm3284_vm0 = vmmov (!%p386_p10), 0   ;;  %v4167_v6 = vmov (!%p386_p10), 0.0   ;;  %p441_p11 = scmp.lt.s32.totalorder (!%p386_p10), %s3273_s20, 1  ;;  %v3286_v8 = vmov (!%p386_p10), 32  }
  0x16   : > { %389 = sbr.rel (%p386_p10) target bundleno = 2698 (0xa8a), region = 60  ;;  %2991 = vmatprep.subr.bf16.mxu1 (!%p386_p10), %v4169_v3  ;;  %2875 = vmatprep.mubr.msk.f32.mxu1 (!%p386_p10), %vm3284_vm0, %v4167_v6  ;;  %s4180_s4 = sld [smem:[#allocation11_spill]] (!%p386_p10)  ;;  %vm472_vm1 = vcmask (!%p386_p10), 261120   ;;  %v626_v21 = vlaneseq (!%p386_p10)  ;;  %v3464_v42 = vld [vmem:[%s4161_s6] sm:$0xff] (!%p386_p10)  ;;  %vm1336_vm2 = vcmask (!%p386_p10), 130048   ;;  %vm1002_vm3 = vcmask (!%p386_p10), 1040384  }
  0x17   : > { %3123 = vset.pattern.permute.xlu0 (!%p386_p10), %v3286_v8  ;;  %s4181_s0 = sld [smem:[#allocation8_spill]] (!%p386_p10)  ;;  %s4182_s2 = sld [smem:[#allocation9_spill]] (!%p386_p10)  ;;  %2893 = vmatprep.mubr.msk.f32.mxu0 (!%p386_p10), %vm1336_vm2, %v3464_v42  ;;  %vm1011_vm4 = vcmask (!%p386_p10), 1041408   ;;  %vm1020_vm5 = vcmask (!%p386_p10), 1042432   ;;  %vm1317_vm6 = vcmask (!%p386_p10), 1043456   ;;  %vm1959_vm7 = vcmask (!%p386_p10), 64512  }
  0x18   : > { %v627_v22 = vshrl.u32 (!%p386_p10), %v626_v21, 7  ;;  %vm2048_vm8 = vcmask (!%p386_p10), 1041409   ;;  %vm2050_vm9 = vcmask (!%p386_p10), 1042434   ;;  %vm2052_vm10 = vcmask (!%p386_p10), 1043459   ;;  %s3287_s26 = smov (!%p386_p10), [#allocation4]  }
  0x19   : > { %vm2054_vm11 = vcmask (!%p386_p10), 1044484   ;;  %vm2056_vm12 = vcmask (!%p386_p10), 1045509   ;;  %vm2058_vm13 = vcmask (!%p386_p10), 1046534   ;;  %vm2060_vm14 = vcmask (!%p386_p10), 1047559  }
  0x1a   : > { %v3449_v25 = vsub.s32 (!%p386_p10), 1, %v627_v22  ;;  %v3451_v26 = vsub.s32 (!%p386_p10), 0, %v627_v22  ;;  %v3455_v30 = vsub.s32 (!%p386_p10), 2, %v627_v22  ;;  %v3457_v31 = vsub.s32 (!%p386_p10), 3, %v627_v22 }
  0x1b   : > { %v463_v0 = vld [vmem:[%s4179_s3] sm:$0xff] (!%p386_p10)  ;;  %v464_v1 = vld [vmem:[%s4179_s3 + $0x8] sm:$0xff] (!%p386_p10)  ;;  %v465_v2 = vld [vmem:[%s4179_s3 + $0x10] sm:$0xff] (!%p386_p10)  ;;  %v656_v34 = vsub.s32 (!%p386_p10), 4, %v627_v22  ;;  %v663_v35 = vsub.s32 (!%p386_p10), 5, %v627_v22  ;;  %v670_v38 = vsub.s32 (!%p386_p10), 6, %v627_v22 }
  0x1c   : > { %v2992_v4 = vpack.c.bf16 (!%p386_p10), %v464_v1, %v463_v0  ;;  %v466_v5 = vld [vmem:[%s4179_s3 + $0x18] sm:$0xff] (!%p386_p10)  ;;  %v547_v7 = vld [vmem:[%s4180_s4] sm:$0xf] (!%p386_p10)  ;;  %v677_v39 = vsub.s32 (!%p386_p10), 7, %v627_v22  ;;  %vm2463_vm15 = vcmask (!%p386_p10), 523264  }
  0x1d   : > { %v2995_v9 = vpack.c.bf16 %v466_v5, %v465_v2  ;;  %s3424_s13 = scalar_select %p441_p11, %s3273_s20, 1  ;;  %550 = vperm.xlu0 %3123, %v547_v7   ;;  %v2765_v17 = vld [vmem:[%s4179_s3 + $0x20] ss:$0 sm:$0xff] }
  0x1e   : > { %2993 = vmatpush3.bf16.msra.mxu1 %v2992_v4 }
  0x1f   : > { %2994 = vmatprep.subr.bf16.mxu1 %v4169_v3  ;;  %s4171_s14 = sshll.u32 %s3424_s13, 3  ;;  %s2803_s15 = sshll.u32 %s3424_s13, 5 }
  0x20   : > { %s3434_s24 = scalar_lea.vmem %s4181_s0, %s4171_s14  ;;  %s456_s12 = scalar_lea.vmem %s4182_s2, %s2803_s15 }
  0x21   : > { %v457_v10 = vld [vmem:[%s3434_s24] sm:$0xff]  ;;  %v460_v12 = vld [vmem:[%s456_s12 + $0x8] sm:$0xff]  ;;  %v461_v13 = vld [vmem:[%s456_s12 + $0x10] sm:$0xff]  ;;  %s4189_s2 = sshll.u32 %s3424_s13, 3  ;;  %s3978_s0 = sand.u32 1, %s3265_s18  }
  0x22   : > { %2996 = vmatpush3.bf16.msra.mxu1 %v2995_v9  ;;  %v459_v11 = vld [vmem:[%s456_s12] sm:$0xff]  ;;  %v462_v15 = vld [vmem:[%s456_s12 + $0x18] sm:$0xff]  ;;  %s451_s15 = scalar_lea.vmem %s4156_s1, %s4189_s2  ;;  %s2759_s2 = sshll.u32 %s3978_s0, 3 }
  0x23   : > { %2997 = vmatprep.subr.bf16.mxu1 %v4169_v3  ;;  %v2998_v14 = vpack.c.bf16 %v460_v12, %v459_v11  ;;  %v3001_v16 = vpack.c.bf16 %v462_v15, %v461_v13  ;;  %s3991_s3 = scalar_lea.vmem [#allocation4], %s2759_s2  ;;  %s4172_s12 = sshll.u32 %s3273_s20, 7 }
  0x24   : > { %s4072_s13 = scalar_lea.hbm %s4166_s11, %s4172_s12  ;;  %s2626_s14 = sshll.u32 %s3991_s3, 4  ;;  %s2627_s14 = int_to_ptr.vmem [resolvable:$true] %s2626_s14 }
  0x25   : > { %2876 = vmatmul.mubr.msk.f32.vlgmr.msra.gmra.mrb[0].mxu1 %vm472_vm1, %v457_v10  ;;  %s2598_s16 = scalar_lea.sflag [#allocation5], %s3978_s0  ;;  %s3171_s23 = scalar_lea.vmem %s2627_s14, 128 }
  0x26   : > { %2999 = vmatpush3.bf16.msra.mxu1 %v2998_v14  ;;  %2886 = vmatprep.mubr.msk.f32.mxu1 %vm3284_vm0, %v4167_v6  ;;  %p3172_p12 = scmp.ne.s32.totalorder %s2627_s14, %s3171_s23 }
  0x27   : > { %3000 = vmatprep.subr.bf16.mxu1 %v4169_v3 }
  0x28   : > { %p3173_p13 = pnand %p3172_p12, %p3389_p4 }
  0x2a   : > { %3002 = vmatpush3.bf16.msra.mxu1 %v3001_v16  ;;  %p3174_p0 = pneg %p3173_p13 }
  0x2d   : > { %2887 = vmatmul.mubr.msk.f32.vlgmr.msra.gmra.mrb[2].mxu1 %vm472_vm1, %v547_v7 }
  0x2e   : > { %2900 = vmatprep.mubr.msk.f32.mxu1 %vm1336_vm2, %v3464_v42 }
  0x9c   : > { %v551_v43 = vpop.permute.xlu0 %550 }
  0xf8   : > { %v542_v18 = vpop.f32.mrb[0].mxu1 }
  0xf9   : > { %v543_v19 = vadd.f32 %v2765_v17, %v542_v18  ;;  %v2877_v20 = vpop.f32.mrb[1].mxu1 }
  0xfb   : > { %3124 = vtanh.f32 %v543_v19 }
 0x100   : > { %v621_v23 = vpop.f32.mrb[2].mxu1 }
 0x101   : > { %v2888_v24 = vpop.f32.mrb[3].mxu1  ;;  %v622_v44 = vadd.f32 %v621_v23, %v551_v43 }
 0x103   : > { %3126 = vtanh.f32 %v622_v44 }
 0x105   : > { %v3125_v27 = vpop.eup %3124 }
 0x106   : > { %v636_v28 = vrot.slane %v3125_v27, %v3449_v25  ;;  %v629_v29 = vrot.slane %v3125_v27, %v3451_v26  ;;  %v643_v32 = vrot.slane %v3125_v27, %v3455_v30  ;;  %v650_v33 = vrot.slane %v3125_v27, %v3457_v31 }
 0x107   : > { %v657_v36 = vrot.slane %v3125_v27, %v656_v34  ;;  %v664_v37 = vrot.slane %v3125_v27, %v663_v35  ;;  %v671_v40 = vrot.slane %v3125_v27, %v670_v38  ;;  %v678_v41 = vrot.slane %v3125_v27, %v677_v39 }
 0x108   : > { %638 = vbcast.lane.b32.xlu1 %v636_v28, 256  ;;  %631 = vbcast.lane.b32.xlu0 %v629_v29, 256 }
 0x10c   : > { %645 = vbcast.lane.b32.xlu1 %v643_v32, 256  ;;  %652 = vbcast.lane.b32.xlu0 %v650_v33, 256 }
 0x10d   : > { %v3127_v45 = vpop.eup %3126 }
 0x110   : > { %659 = vbcast.lane.b32.xlu1 %v657_v36, 256  ;;  %666 = vbcast.lane.b32.xlu0 %v664_v37, 256 }
 0x114   : > { %673 = vbcast.lane.b32.xlu1 %v671_v40, 256  ;;  %680 = vbcast.lane.b32.xlu0 %v678_v41, 256 }
 0x17a   : > { %v639_v46 = vpop.permute.xlu1 %638  ;;  %v632_v47 = vpop.permute.xlu0 %631 }
 0x17b   : > { %v683_v48 = vadd.f32 %v3127_v45, %v639_v46  ;;  %v682_v49 = vadd.f32 %v3127_v45, %v632_v47 }
 0x17d   : > { %3128 = vtanh.f32 %v683_v48 }
 0x17e   : > { %3130 = vtanh.f32 %v682_v49  ;;  %v646_v50 = vpop.permute.xlu1 %645  ;;  %v653_v51 = vpop.permute.xlu0 %652 }
 0x17f   : > { %v684_v52 = vadd.f32 %v3127_v45, %v646_v50  ;;  %v685_v53 = vadd.f32 %v3127_v45, %v653_v51 }
 0x181   : > { %3132 = vtanh.f32 %v684_v52 }
 0x182   : > { %3134 = vtanh.f32 %v685_v53  ;;  %v660_v55 = vpop.permute.xlu1 %659  ;;  %v667_v58 = vpop.permute.xlu0 %666 }
 0x183   : > { %v686_v61 = vadd.f32 %v3127_v45, %v660_v55  ;;  %v687_v0 = vadd.f32 %v3127_v45, %v667_v58 }
 0x185   : > { %3136 = vtanh.f32 %v686_v61 }
 0x186   : > { %3138 = vtanh.f32 %v687_v0  ;;  %v674_v16 = vpop.permute.xlu1 %673  ;;  %v681_v21 = vpop.permute.xlu0 %680 }
 0x187   : > { %v3129_v54 = vpop.eup %3128  ;;  %v688_v33 = vadd.f32 %v3127_v45, %v674_v16  ;;  %v689_v37 = vadd.f32 %v3127_v45, %v681_v21 }
 0x188   : > { %v3131_v56 = vpop.eup %3130  ;;  %v3470_v57 = vmul.f32 0.5, %v3129_v54 }
 0x189   : > { %v3472_v59 = vmul.f32 0.5, %v3131_v56  ;;  %3140 = vtanh.f32 %v688_v33 }
 0x18a   : > { %v707_v60 = vmul.f32 %v3470_v57, %v3470_v57  ;;  %3142 = vtanh.f32 %v689_v37 }
 0x18b   : > { %v3133_v62 = vpop.eup %3132  ;;  %v706_v63 = vmul.f32 %v3472_v59, %v3472_v59 }
 0x18c   : > { %v3135_v1 = vpop.eup %3134  ;;  %v715_v2 = vmul.f32 2.4801588e-05, %v707_v60  ;;  %v779_v4 = vmul.f32 2.7557319e-06, %v707_v60  ;;  %v3478_v5 = vmul.f32 0.5, %v3133_v62 }
 0x18d   : > { %v714_v7 = vmul.f32 2.4801588e-05, %v706_v63  ;;  %v778_v8 = vmul.f32 2.7557319e-06, %v706_v63  ;;  %v3480_v9 = vmul.f32 0.5, %v3135_v1 }
 0x18e   : > { %v723_v10 = vadd.f32 -0.0013888889, %v715_v2  ;;  %v787_v11 = vadd.f32 -0.0001984127, %v779_v4  ;;  %v3484_v12 = vmul.f32 %v3478_v5, %v3478_v5 }
 0x18f   : > { %v722_v13 = vadd.f32 -0.0013888889, %v714_v7  ;;  %v786_v14 = vadd.f32 -0.0001984127, %v778_v8  ;;  %v3488_v15 = vmul.f32 %v3480_v9, %v3480_v9  ;;  %v3137_v55 = vpop.eup %3136 }
 0x190   : > { %v731_v17 = vmul.f32 %v723_v10, %v707_v60  ;;  %v795_v18 = vmul.f32 %v787_v11, %v707_v60  ;;  %v716_v19 = vmul.f32 2.4801588e-05, %v3484_v12  ;;  %v780_v20 = vmul.f32 2.7557319e-06, %v3484_v12  ;;  %v3139_v0 = vpop.eup %3138 }
 0x191   : > { %v730_v22 = vmul.f32 %v722_v13, %v706_v63  ;;  %v794_v23 = vmul.f32 %v786_v14, %v706_v63  ;;  %v717_v24 = vmul.f32 2.4801588e-05, %v3488_v15  ;;  %v781_v27 = vmul.f32 2.7557319e-06, %v3488_v15 }
 0x192   : > { %v739_v28 = vadd.f32 0.041666668, %v731_v17  ;;  %v803_v29 = vadd.f32 0.008333334, %v795_v18  ;;  %v724_v32 = vadd.f32 -0.0013888889, %v716_v19 }
 0x193   : > { %v738_v34 = vadd.f32 0.041666668, %v730_v22  ;;  %v802_v35 = vadd.f32 0.008333334, %v794_v23  ;;  %v788_v36 = vadd.f32 -0.0001984127, %v780_v20 }
 0x194   : > { %v747_v38 = vmul.f32 %v739_v28, %v707_v60  ;;  %v811_v39 = vmul.f32 %v803_v29, %v707_v60  ;;  %v732_v40 = vmul.f32 %v724_v32, %v3484_v12  ;;  %v725_v41 = vadd.f32 -0.0013888889, %v717_v24 }
 0x195   : > { %v746_v43 = vmul.f32 %v738_v34, %v706_v63  ;;  %v810_v44 = vmul.f32 %v802_v35, %v706_v63  ;;  %v796_v46 = vmul.f32 %v788_v36, %v3484_v12  ;;  %v789_v47 = vadd.f32 -0.0001984127, %v781_v27 }
 0x196   : > { %v755_v48 = vadd.f32 -0.5, %v747_v38  ;;  %v819_v49 = vadd.f32 -0.16666667, %v811_v39  ;;  %v740_v50 = vadd.f32 0.041666668, %v732_v40  ;;  %v733_v51 = vmul.f32 %v725_v41, %v3488_v15 }
 0x197   : > { %v754_v52 = vadd.f32 -0.5, %v746_v43  ;;  %v818_v53 = vadd.f32 -0.16666667, %v810_v44  ;;  %v804_v54 = vadd.f32 0.008333334, %v796_v46  ;;  %v797_v45 = vmul.f32 %v789_v47, %v3488_v15 }
 0x198   : > { %v763_v56 = vmul.f32 %v755_v48, %v707_v60  ;;  %v827_v58 = vmul.f32 %v819_v49, %v707_v60  ;;  %v748_v61 = vmul.f32 %v740_v50, %v3484_v12  ;;  %v741_v62 = vadd.f32 0.041666668, %v733_v51 }
 0x199   : > { %v762_v1 = vmul.f32 %v754_v52, %v706_v63  ;;  %v826_v2 = vmul.f32 %v818_v53, %v706_v63  ;;  %v812_v4 = vmul.f32 %v804_v54, %v3484_v12  ;;  %v805_v7 = vadd.f32 0.008333334, %v797_v45 }
 0x19a   : > { %v771_v8 = vadd.f32 1.0, %v763_v56  ;;  %v835_v10 = vadd.f32 1.0, %v827_v58  ;;  %v756_v11 = vadd.f32 -0.5, %v748_v61  ;;  %v749_v13 = vmul.f32 %v741_v62, %v3488_v15  ;;  %v3141_v58 = vpop.eup %3140 }
 0x19b   : > { %v770_v14 = vadd.f32 1.0, %v762_v1  ;;  %v834_v16 = vadd.f32 1.0, %v826_v2  ;;  %v820_v17 = vadd.f32 -0.16666667, %v812_v4  ;;  %v813_v18 = vmul.f32 %v805_v7, %v3488_v15 }
 0x19c   : > { %v843_v60 = vmul.f32 %v835_v10, %v3470_v57  ;;  %v859_v19 = vrot.slane %v771_v8, 1  ;;  %v764_v20 = vmul.f32 %v756_v11, %v3484_v12  ;;  %v757_v23 = vadd.f32 -0.5, %v749_v13 }
 0x19d   : > { %v842_v63 = vmul.f32 %v834_v16, %v3472_v59  ;;  %v858_v21 = vrot.slane %v770_v14, 1  ;;  %v828_v22 = vmul.f32 %v820_v17, %v3484_v12  ;;  %v821_v29 = vadd.f32 -0.16666667, %v813_v18 }
 0x19e   : > { %v875_v24 = vmul.f32 %v859_v19, %v771_v8  ;;  %v883_v27 = vmul.f32 %v859_v19, %v843_v60  ;;  %v899_v28 = vrot.slane %v843_v60, 1  ;;  %v772_v41 = vadd.f32 1.0, %v764_v20 }
 0x19f   : > { %v3506_v32 = vmul.f32 %v858_v21, %v770_v14  ;;  %v3508_v34 = vmul.f32 %v858_v21, %v842_v63  ;;  %v898_v35 = vrot.slane %v842_v63, 1  ;;  %v836_v57 = vadd.f32 1.0, %v828_v22 }
 0x1a0   : > { %v3510_v36 = vmul.f32 %v899_v28, %v771_v8  ;;  %v3512_v38 = vmul.f32 %v899_v28, %v843_v60  ;;  %v939_v33 = vrot.slane %v883_v27, 7  ;;  %v1038_v59 = vrot.slane %v875_v24, 2 }
 0x1a1   : > { %v1054_v39 = vrot.slane %v883_v27, 1  ;;  %v3514_v40 = vmul.f32 %v898_v35, %v770_v14  ;;  %v3516_v12 = vmul.f32 %v898_v35, %v842_v63  ;;  %v938_v44 = vrot.slane %v3508_v34, 7 }
 0x1a2   : > { %v963_v43 = vrot.slane %v3510_v36, 6  ;;  %v987_v46 = vrot.slane %v3512_v38, 5  ;;  %v3522_v47 = vsel %vm1002_vm3, %v875_v24, %v939_v33  ;;  %v1070_v48 = vrot.slane %v3512_v38, 7 }
 0x1a3   : > { %v1086_v49 = vsel %vm1002_vm3, %v1038_v59, %v1054_v39  ;;  %v962_v50 = vrot.slane %v3514_v40, 6  ;;  %v986_v51 = vrot.slane %v3516_v12, 5  ;;  %v1037_v52 = vrot.slane %v3506_v32, 2 }
 0x1a4   : > { %v844_v53 = vmul.f32 %v836_v57, %v3478_v5  ;;  %v860_v54 = vrot.slane %v772_v41, 1  ;;  %v765_v37 = vmul.f32 %v757_v23, %v3488_v15  ;;  %v829_v45 = vmul.f32 %v821_v29, %v3488_v15  ;;  %v3143_v23 = vpop.eup %3142 }
 0x1a5   : > { %v3532_v56 = vmul.f32 0.5, %v3137_v55  ;;  %v3536_v61 = vsel %vm1011_vm4, %v1086_v49, %v3510_v36  ;;  %v1053_v62 = vrot.slane %v3508_v34, 1  ;;  %v3539_v2 = vmul.f32 0.5, %v3139_v0 }
 0x1a6   : > { %v900_v1 = vrot.slane %v844_v53, 1  ;;  %v876_v4 = vmul.f32 %v860_v54, %v772_v41  ;;  %v884_v7 = vmul.f32 %v860_v54, %v844_v53  ;;  %v773_v5 = vadd.f32 1.0, %v765_v37 }
 0x1a7   : > { %v837_v8 = vadd.f32 1.0, %v829_v45  ;;  %v1069_v10 = vrot.slane %v3516_v12, 7  ;;  %v3548_v55 = vmul.f32 %v3532_v56, %v3532_v56  ;;  %v3553_v0 = vmul.f32 %v3539_v2, %v3539_v2 }
 0x1a8   : > { %v3542_v11 = vmul.f32 %v900_v1, %v772_v41  ;;  %v3544_v15 = vmul.f32 %v900_v1, %v844_v53  ;;  %v1039_v13 = vrot.slane %v876_v4, 2  ;;  %v1055_v14 = vrot.slane %v884_v7, 1 }
 0x1a9   : > { %v845_v16 = vmul.f32 %v837_v8, %v3480_v9  ;;  %v3556_v17 = vsel %vm1002_vm3, %v1037_v52, %v1053_v62  ;;  %v940_v18 = vrot.slane %v884_v7, 7  ;;  %v861_v60 = vrot.slane %v773_v5, 1 }
 0x1aa   : > { %v3558_v19 = vmul.f32 0.5, %v3141_v58  ;;  %v964_v20 = vrot.slane %v3542_v11, 6  ;;  %v988_v63 = vrot.slane %v3544_v15, 5  ;;  %v718_v22 = vmul.f32 2.4801588e-05, %v3548_v55 }
 0x1ab   : > { %v901_v21 = vrot.slane %v845_v16, 1  ;;  %v1087_v9 = vsel %vm1002_vm3, %v1039_v13, %v1055_v14  ;;  %v877_v24 = vmul.f32 %v861_v60, %v773_v5  ;;  %v885_v27 = vmul.f32 %v861_v60, %v845_v16 }
 0x1ac   : > { %v782_v28 = vmul.f32 2.7557319e-06, %v3548_v55  ;;  %v726_v57 = vadd.f32 -0.0013888889, %v718_v22  ;;  %v719_v33 = vmul.f32 2.4801588e-05, %v3553_v0  ;;  %v3571_v59 = vsel %vm1002_vm3, %v876_v4, %v940_v18 }
 0x1ad   : > { %v3565_v29 = vmul.f32 %v901_v21, %v773_v5  ;;  %v3567_v35 = vmul.f32 %v901_v21, %v845_v16  ;;  %v1071_v39 = vrot.slane %v3544_v15, 7  ;;  %v941_v41 = vrot.slane %v885_v27, 7 }
 0x1ae   : > { %v790_v49 = vadd.f32 -0.0001984127, %v782_v28  ;;  %v3576_v52 = vsel %vm1011_vm4, %v1087_v9, %v3542_v11  ;;  %v1040_v53 = vrot.slane %v877_v24, 2  ;;  %v1056_v54 = vrot.slane %v885_v27, 1 }
 0x1af   : > { %v734_v37 = vmul.f32 %v726_v57, %v3548_v55  ;;  %v727_v1 = vadd.f32 -0.0013888889, %v719_v33  ;;  %v783_v5 = vmul.f32 2.7557319e-06, %v3553_v0  ;;  %v712_v8 = vmul.f32 %v3558_v19, %v3558_v19 }
 0x1b0   : > { %v798_v62 = vmul.f32 %v790_v49, %v3548_v55  ;;  %v3587_v13 = vsel %vm1002_vm3, %v877_v24, %v941_v41  ;;  %v3590_v18 = vmul.f32 0.5, %v3143_v23  ;;  %v1088_v27 = vsel %vm1002_vm3, %v1040_v53, %v1056_v54 }
 0x1b1   : > { %v742_v7 = vadd.f32 0.041666668, %v734_v37  ;;  %v735_v16 = vmul.f32 %v727_v1, %v3553_v0  ;;  %v791_v21 = vadd.f32 -0.0001984127, %v783_v5  ;;  %v720_v22 = vmul.f32 2.4801588e-05, %v712_v8 }
 0x1b2   : > { %v806_v14 = vadd.f32 0.008333334, %v798_v62  ;;  %v784_v9 = vmul.f32 2.7557319e-06, %v712_v8  ;;  %v3597_v33 = vmul.f32 %v3590_v18, %v3590_v18  ;;  %v1103_v11 = vsel %vm1020_vm5, %v3576_v52, %v1071_v39 }
 0x1b3   : > { %v750_v60 = vmul.f32 %v742_v7, %v3548_v55  ;;  %v743_v57 = vadd.f32 0.041666668, %v735_v16  ;;  %v799_v41 = vmul.f32 %v791_v21, %v3553_v0  ;;  %v728_v49 = vadd.f32 -0.0013888889, %v720_v22 }
 0x1b4   : > { %v814_v28 = vmul.f32 %v806_v14, %v3548_v55  ;;  %v792_v23 = vadd.f32 -0.0001984127, %v784_v9  ;;  %v721_v1 = vmul.f32 2.4801588e-05, %v3597_v33  ;;  %v785_v7 = vmul.f32 2.7557319e-06, %v3597_v33 }
 0x1b5   : > { %v758_v24 = vadd.f32 -0.5, %v750_v60  ;;  %v751_v62 = vmul.f32 %v743_v57, %v3553_v0  ;;  %v807_v54 = vadd.f32 0.008333334, %v799_v41  ;;  %v736_v5 = vmul.f32 %v728_v49, %v712_v8 }
 0x1b6   : > { %v822_v37 = vadd.f32 -0.16666667, %v814_v28  ;;  %v800_v14 = vmul.f32 %v792_v23, %v712_v8  ;;  %v3606_v16 = vsel %vm1011_vm4, %v1088_v27, %v3565_v29  ;;  %v729_v22 = vadd.f32 -0.0013888889, %v721_v1 }
 0x1b7   : > { %v766_v53 = vmul.f32 %v758_v24, %v3548_v55  ;;  %v759_v21 = vadd.f32 -0.5, %v751_v62  ;;  %v815_v28 = vmul.f32 %v807_v54, %v3553_v0  ;;  %v744_v57 = vadd.f32 0.041666668, %v736_v5 }
 0x1b8   : > { %v830_v60 = vmul.f32 %v822_v37, %v3548_v55  ;;  %v808_v6 = vadd.f32 0.008333334, %v800_v14  ;;  %v737_v24 = vmul.f32 %v729_v22, %v3597_v33  ;;  %v793_v41 = vadd.f32 -0.0001984127, %v785_v7 }
 0x1b9   : > { %v774_v9 = vadd.f32 1.0, %v766_v53  ;;  %v767_v58 = vmul.f32 %v759_v21, %v3553_v0  ;;  %v823_v23 = vadd.f32 -0.16666667, %v815_v28  ;;  %v752_v4 = vmul.f32 %v744_v57, %v712_v8 }
 0x1ba   : > { %v838_v3 = vadd.f32 1.0, %v830_v60  ;;  %v816_v27 = vmul.f32 %v808_v6, %v712_v8  ;;  %v745_v37 = vadd.f32 0.041666668, %v737_v24  ;;  %v1003_v62 = vsel %vm1002_vm3, %v3506_v32, %v938_v44 }
 0x1bb   : > { %v862_v49 = vrot.slane %v774_v9, 1  ;;  %v775_v55 = vadd.f32 1.0, %v767_v58  ;;  %v831_v53 = vmul.f32 %v823_v23, %v3553_v0  ;;  %v760_v54 = vadd.f32 -0.5, %v752_v4 }
 0x1bc   : > { %v846_v45 = vmul.f32 %v838_v3, %v3532_v56  ;;  %v824_v5 = vadd.f32 -0.16666667, %v816_v27  ;;  %v801_v21 = vmul.f32 %v793_v41, %v3597_v33  ;;  %v753_v32 = vmul.f32 %v745_v37, %v3597_v33 }
 0x1bd   : > { %v878_v1 = vmul.f32 %v862_v49, %v774_v9  ;;  %v863_v60 = vrot.slane %v775_v55, 1  ;;  %v839_v22 = vadd.f32 1.0, %v831_v53  ;;  %v768_v3 = vmul.f32 %v760_v54, %v712_v8 }
 0x1be   : > { %v886_v14 = vmul.f32 %v862_v49, %v846_v45  ;;  %v902_v7 = vrot.slane %v846_v45, 1  ;;  %v832_v56 = vmul.f32 %v824_v5, %v712_v8  ;;  %v809_v49 = vadd.f32 0.008333334, %v801_v21 }
 0x1bf   : > { %v1041_v6 = vrot.slane %v878_v1, 2  ;;  %v847_v44 = vmul.f32 %v839_v22, %v3539_v2  ;;  %v879_v0 = vmul.f32 %v863_v60, %v775_v55  ;;  %v776_v4 = vadd.f32 1.0, %v768_v3 }
 0x1c0   : > { %v3619_v58 = vmul.f32 %v902_v7, %v774_v9  ;;  %v3621_v34 = vmul.f32 %v902_v7, %v846_v45  ;;  %v1057_v28 = vrot.slane %v886_v14, 1  ;;  %v840_v57 = vadd.f32 1.0, %v832_v56 }
 0x1c1   : > { %v942_v24 = vrot.slane %v886_v14, 7  ;;  %v1012_v8 = vsel %vm1011_vm4, %v1003_v62, %v962_v50  ;;  %v887_v23 = vmul.f32 %v863_v60, %v847_v44  ;;  %v903_v27 = vrot.slane %v847_v44, 1 }
 0x1c2   : > { %v966_v41 = vrot.slane %v3619_v58, 6  ;;  %v990_v45 = vrot.slane %v3621_v34, 5  ;;  %v1089_v9 = vsel %vm1002_vm3, %v1041_v6, %v1057_v28  ;;  %v1042_v37 = vrot.slane %v879_v0, 2 }
 0x1c3   : > { %v848_v2 = vmul.f32 %v840_v57, %v3558_v19  ;;  %v864_v53 = vrot.slane %v776_v4, 1  ;;  %v761_v54 = vadd.f32 -0.5, %v753_v32  ;;  %v3632_v5 = vmul.f32 %v903_v27, %v775_v55 }
 0x1c4   : > { %v3634_v14 = vmul.f32 %v903_v27, %v847_v44  ;;  %v943_v7 = vrot.slane %v887_v23, 7  ;;  %v1058_v21 = vrot.slane %v887_v23, 1  ;;  %v3638_v6 = vsel %vm1002_vm3, %v878_v1, %v942_v24 }
 0x1c5   : > { %v880_v22 = vmul.f32 %v864_v53, %v776_v4  ;;  %v888_v3 = vmul.f32 %v864_v53, %v848_v2  ;;  %v904_v50 = vrot.slane %v848_v2, 1  ;;  %v769_v62 = vmul.f32 %v761_v54, %v3597_v33 }
 0x1c6   : > { %v1073_v60 = vrot.slane %v3621_v34, 7  ;;  %v3643_v19 = vsel %vm1011_vm4, %v1089_v9, %v3619_v58  ;;  %v967_v55 = vrot.slane %v3632_v5, 6  ;;  %v1090_v56 = vsel %vm1002_vm3, %v1042_v37, %v1058_v21 }
 0x1c7   : > { %v3647_v28 = vmul.f32 %v904_v50, %v776_v4  ;;  %v3649_v32 = vmul.f32 %v904_v50, %v848_v2  ;;  %v944_v44 = vrot.slane %v888_v3, 7  ;;  %v991_v57 = vrot.slane %v3634_v14, 5 }
 0x1c8   : > { %v3653_v1 = vsel %vm1002_vm3, %v879_v0, %v943_v7  ;;  %v1074_v24 = vrot.slane %v3634_v14, 7  ;;  %v777_v23 = vadd.f32 1.0, %v769_v62  ;;  %v3658_v9 = vsel %vm1011_vm4, %v1090_v56, %v3632_v5 }
 0x1c9   : > { %v968_v27 = vrot.slane %v3647_v28, 6  ;;  %v1043_v4 = vrot.slane %v880_v22, 2  ;;  %v1059_v37 = vrot.slane %v888_v3, 1  ;;  %v3663_v53 = vsel %vm1002_vm3, %v880_v22, %v944_v44 }
 0x1ca   : > { %v817_v0 = vmul.f32 %v809_v49, %v3597_v33  ;;  %v865_v54 = vrot.slane %v777_v23, 1  ;;  %v1021_v7 = vsel %vm1020_vm5, %v1012_v8, %v986_v51  ;;  %v1093_v21 = vsel %vm1011_vm4, %v3556_v17, %v3514_v40 }
 0x1cb   : > { %v1013_v3 = vsel %vm1011_vm4, %v3522_v47, %v963_v43  ;;  %v1102_v22 = vsel %vm1020_vm5, %v3536_v61, %v1070_v48  ;;  %v1101_v51 = vsel %vm1020_vm5, %v1093_v21, %v1069_v10  ;;  %v1091_v48 = vsel %vm1002_vm3, %v1043_v4, %v1059_v37 }
 0x1cc   : > { %v825_v49 = vadd.f32 -0.16666667, %v817_v0  ;;  %v881_v50 = vmul.f32 %v865_v54, %v777_v23  ;;  %v1022_v40 = vsel %vm1020_vm5, %v1013_v3, %v987_v46  ;;  %v1112_v36 = vrot.slane %v1101_v51, %v3451_v26 }
 0x1cd   : > { %v1152_v17 = vrot.slane %v1101_v51, %v3449_v25  ;;  %v1192_v43 = vrot.slane %v1101_v51, %v3455_v30  ;;  %v1232_v47 = vrot.slane %v1101_v51, %v3457_v31  ;;  %v1116_v12 = vrot.slane %v1102_v22, %v3451_v26 }
 0x1ce   : > { %v833_v61 = vmul.f32 %v825_v49, %v3597_v33  ;;  %v1156_v10 = vrot.slane %v1102_v22, %v3449_v25  ;;  %v1044_v8 = vrot.slane %v881_v50, 2  ;;  %v1141_v38 = vmul.f32 %v1112_v36, %v1021_v7 }
 0x1cf   : > { %v1181_v62 = vmul.f32 %v1152_v17, %v1021_v7  ;;  %v1261_v46 = vmul.f32 %v1232_v47, %v1021_v7  ;;  %v1221_v44 = vmul.f32 %v1192_v43, %v1021_v7  ;;  %v1196_v21 = vrot.slane %v1102_v22, %v3455_v30 }
 0x1d0   : > { %v841_v56 = vadd.f32 1.0, %v833_v61  ;;  %v1182_v0 = vmul.f32 %v1156_v10, %v1022_v40  ;;  %v1236_v51 = vrot.slane %v1102_v22, %v3457_v31  ;;  %v1014_v33 = vsel %vm1011_vm4, %v3571_v59, %v964_v20 }
 0x1d1   : > { %v1277_v3 = vrot.slane %v1181_v62, 4  ;;  %v1301_v2 = vrot.slane %v1261_v46, 4  ;;  %v1142_v37 = vmul.f32 %v1116_v12, %v1022_v40  ;;  %v1222_v49 = vmul.f32 %v1196_v21, %v1022_v40 }
 0x1d2   : > { %v849_v4 = vmul.f32 %v841_v56, %v3590_v18  ;;  %v1278_v36 = vrot.slane %v1182_v0, 4  ;;  %v1262_v43 = vmul.f32 %v1236_v51, %v1022_v40  ;;  %v1023_v59 = vsel %vm1020_vm5, %v1014_v33, %v988_v63 }
 0x1d3   : > { %v3702_v17 = vsel %vm1317_vm6, %v1141_v38, %v1277_v3  ;;  %v3705_v7 = vsel %vm1317_vm6, %v1221_v44, %v1301_v2  ;;  %v1120_v61 = vrot.slane %v1103_v11, %v3451_v26  ;;  %v1160_v2 = vrot.slane %v1103_v11, %v3449_v25 }
 0x1d4   : > { %v889_v22 = vmul.f32 %v865_v54, %v849_v4  ;;  %v905_v47 = vrot.slane %v849_v4, 1  ;;  %v3003_v20 = vpack.c.bf16 %v3705_v7, %v3702_v17  ;;  %v1302_v18 = vrot.slane %v1262_v43, 4 }
 0x1d5   : > { %v1200_v40 = vrot.slane %v1103_v11, %v3455_v30  ;;  %v3722_v52 = vsel %vm1317_vm6, %v1142_v37, %v1278_v36  ;;  %v1075_v54 = vrot.slane %v3649_v32, 7  ;;  %v3727_v15 = vsel %vm1011_vm4, %v1091_v48, %v3647_v28 }
 0x1d6   : > { %v3719_v12 = vmul.f32 %v905_v47, %v777_v23  ;;  %v945_v10 = vrot.slane %v889_v22, 7  ;;  %v1060_v39 = vrot.slane %v889_v22, 1  ;;  %3004 = vmatprep.subr.bf16.mxu0 %v3003_v20  ;;  %v3730_v63 = vsel %vm1317_vm6, %v1222_v49, %v1302_v18  ;;  %v3735_v23 = vld [vmem:[%s4161_s6 + $0x8] sm:$0xff] }
 0x1d7   : > { %3006 = vmatpush3.bf16.msra.mxu0 %v3003_v20  ;;  %v1183_v38 = vmul.f32 %v1160_v2, %v1023_v59  ;;  %v3737_v62 = vmul.f32 %v905_v47, %v849_v4  ;;  %v1143_v56 = vmul.f32 %v1120_v61, %v1023_v59  ;;  %v1223_v44 = vmul.f32 %v1200_v40, %v1023_v59 }
 0x1d8   : > { %v969_v46 = vrot.slane %v3719_v12, 6  ;;  %v1092_v0 = vsel %vm1002_vm3, %v1044_v8, %v1060_v39  ;;  %v3007_v48 = vpack.c.bf16 %v3730_v63, %v3722_v52  ;;  %v1240_v21 = vrot.slane %v1103_v11, %v3457_v31 }
 0x1d9   : > { %v1279_v3 = vrot.slane %v1183_v38, 4  ;;  %v3745_v51 = vsel %vm1002_vm3, %v881_v50, %v945_v10  ;;  %v3749_v33 = vsel %vm1011_vm4, %v1092_v0, %v3719_v12  ;;  %v4183_v4 = vrot.slane %v3565_v29, 6 }
 0x1da   : > { %2894 = vmatmul.mubr.msk.f32.vlgmr.msra.gmra.mrb[0].mxu0 %vm1336_vm2, %v3735_v23  ;;  %v4184_v37 = vrot.slane %v3567_v35, 7  ;;  %3008 = vmatprep.subr.bf16.mxu1 %v3007_v48  ;;  %v1263_v50 = vmul.f32 %v1240_v21, %v1023_v59  ;;  %v4185_v36 = vrot.slane %v3567_v35, 5  ;;  %v1016_v29 = vsel %vm1011_vm4, %v3638_v6, %v966_v41 }
 0x1db   : > { %v1015_v8 = vsel %vm1011_vm4, %v3587_v13, %v4183_v4  ;;  %v1076_v13 = vrot.slane %v3737_v62, 7  ;;  %3010 = vmatpush3.bf16.msra.mxu1 %v3007_v48  ;;  %2907 = vmatprep.mubr.msk.f32.mxu0 %vm1336_vm2, %v3464_v42  ;;  %v3776_v20 = vsel %vm1317_vm6, %v1143_v56, %v1279_v3  ;;  %v1105_v41 = vsel %vm1020_vm5, %v3643_v19, %v1073_v60 }
 0x1dc   : > { %v1104_v49 = vsel %vm1020_vm5, %v3606_v16, %v4184_v37  ;;  %v1024_v43 = vsel %vm1020_vm5, %v1015_v8, %v4185_v36  ;;  %v1303_v35 = vrot.slane %v1263_v50, 4  ;;  %v1025_v18 = vsel %vm1020_vm5, %v1016_v29, %v990_v45 }
 0x1dd   : > { %v1124_v11 = vrot.slane %v1104_v49, %v3451_v26  ;;  %v1164_v22 = vrot.slane %v1104_v49, %v3449_v25  ;;  %v1204_v16 = vrot.slane %v1104_v49, %v3455_v30  ;;  %v1244_v47 = vrot.slane %v1104_v49, %v3457_v31 }
 0x1de   : > { %v1128_v61 = vrot.slane %v1105_v41, %v3451_v26  ;;  %2901 = vmatmul.mubr.msk.f32.vlgmr.msra.gmra.mrb[4].mxu1 %vm1336_vm2, %v3735_v23  ;;  %v3789_v2 = vsel %vm1317_vm6, %v1223_v44, %v1303_v35  ;;  %v1168_v40 = vrot.slane %v1105_v41, %v3449_v25  ;;  %v1208_v10 = vrot.slane %v1105_v41, %v3455_v30 }
 0x1df   : > { %v1144_v58 = vmul.f32 %v1124_v11, %v1024_v43  ;;  %v1184_v6 = vmul.f32 %v1164_v22, %v1024_v43  ;;  %v1264_v59 = vmul.f32 %v1244_v47, %v1024_v43  ;;  %v1248_v60 = vrot.slane %v1105_v41, %v3457_v31  ;;  %2914 = vmatprep.mubr.msk.f32.mxu1 %vm1336_vm2, %v3464_v42 }
 0x1e0   : > { %v3011_v19 = vpack.c.bf16 %v3789_v2, %v3776_v20  ;;  %v1224_v34 = vmul.f32 %v1204_v16, %v1024_v43  ;;  %v1145_v38 = vmul.f32 %v1128_v61, %v1025_v18  ;;  %v1185_v56 = vmul.f32 %v1168_v40, %v1025_v18 }
 0x1e1   : > { %v1280_v39 = vrot.slane %v1184_v6, 4  ;;  %v1304_v45 = vrot.slane %v1264_v59, 4  ;;  %v1265_v0 = vmul.f32 %v1248_v60, %v1025_v18  ;;  %v1017_v44 = vsel %vm1011_vm4, %v3653_v1, %v967_v55 }
 0x1e2   : > { %3012 = vmatprep.subr.bf16.mxu0 %v3011_v19  ;;  %v1225_v3 = vmul.f32 %v1208_v10, %v1025_v18  ;;  %v1106_v4 = vsel %vm1020_vm5, %v3658_v9, %v1074_v24  ;;  %v1281_v5 = vrot.slane %v1185_v56, 4  ;;  %v1026_v55 = vsel %vm1020_vm5, %v1017_v44, %v991_v57 }
 0x1e3   : > { %v3803_v48 = vsel %vm1317_vm6, %v1144_v58, %v1280_v39  ;;  %v3806_v21 = vsel %vm1317_vm6, %v1224_v34, %v1304_v45  ;;  %3014 = vmatpush3.bf16.msra.mxu0 %v3011_v19  ;;  %v1305_v37 = vrot.slane %v1265_v0, 4  ;;  %v1132_v1 = vrot.slane %v1106_v4, %v3451_v26 }
 0x1e4   : > { %v3015_v8 = vpack.c.bf16 %v3806_v21, %v3803_v48  ;;  %v1172_v49 = vrot.slane %v1106_v4, %v3449_v25  ;;  %v1252_v50 = vrot.slane %v1106_v4, %v3457_v31  ;;  %v1018_v24 = vsel %vm1011_vm4, %v3663_v53, %v968_v27 }
 0x1e5   : > { %v3825_v9 = vsel %vm1317_vm6, %v1145_v38, %v1281_v5  ;;  %v3828_v36 = vsel %vm1317_vm6, %v1225_v3, %v1305_v37  ;;  %v1212_v14 = vrot.slane %v1106_v4, %v3455_v30  ;;  %v993_v57 = vrot.slane %v3737_v62, 5  ;;  %v2161_v37 = vld [vmem:[%s4160_s5 + $0x8] sm:$0xff] }
 0x1e6   : > { %3016 = vmatprep.subr.bf16.mxu1 %v3015_v8  ;;  %2908 = vmatmul.mubr.msk.f32.vlgmr.msra.gmra.mrb[2].mxu0 %vm1336_vm2, %v3735_v23  ;;  %v3019_v28 = vpack.c.bf16 %v3828_v36, %v3825_v9  ;;  %v1186_v43 = vmul.f32 %v1172_v49, %v1026_v55  ;;  %v4186_v27 = vrot.slane %v3649_v32, 5  ;;  %v1266_v11 = vmul.f32 %v1252_v50, %v1026_v55  ;;  %v458_v50 = vld [vmem:[%s451_s15] sm:$0xff] }
 0x1e7   : > { %3018 = vmatpush3.bf16.msra.mxu1 %v3015_v8  ;;  %2921 = vmatprep.mubr.msk.f32.mxu0 %vm1336_vm2, %v3464_v42  ;;  %v1107_v62 = vsel %vm1020_vm5, %v3727_v15, %v1075_v54  ;;  %v1019_v29 = vsel %vm1011_vm4, %v3745_v51, %v969_v46  ;;  %v1108_v22 = vsel %vm1020_vm5, %v3749_v33, %v1076_v13  ;;  %v4187_v8 = vmov 0.0|0.0  }
 0x1e8   : > { %v1027_v53 = vsel %vm1020_vm5, %v1018_v24, %v4186_v27  ;;  %3020 = vmatprep.subr.bf16.mxu0 %v3019_v28  ;;  %v1146_v16 = vmul.f32 %v1132_v1, %v1026_v55  ;;  %v1282_v47 = vrot.slane %v1186_v43, 4  ;;  %v1136_v35 = vrot.slane %v1107_v62, %v3451_v26 }
 0x1e9   : > { %v1176_v58 = vrot.slane %v1107_v62, %v3449_v25  ;;  %v1226_v32 = vmul.f32 %v1212_v14, %v1026_v55  ;;  %v1306_v54 = vrot.slane %v1266_v11, 4  ;;  %3022 = vmatpush3.bf16.msra.mxu0 %v3019_v28  ;;  %v1216_v12 = vrot.slane %v1107_v62, %v3455_v30  ;;  %v2162_v55 = vld [vmem:[%s4160_s5 + $0x10] sm:$0xff] }
 0x1ea   : > { %2915 = vmatmul.mubr.msk.f32.vlgmr.msra.gmra.mrb[6].mxu1 %vm1336_vm2, %v3735_v23  ;;  %v1256_v15 = vrot.slane %v1107_v62, %v3457_v31  ;;  %v3858_v46 = vsel %vm1317_vm6, %v1146_v16, %v1282_v47  ;;  %v1028_v33 = vsel %vm1020_vm5, %v1019_v29, %v993_v57  ;;  %v1140_v13 = vrot.slane %v1108_v22, %v3451_v26 }
 0x1eb   : > { %2928 = vmatprep.mubr.msk.f32.mxu1 %vm1336_vm2, %v3464_v42  ;;  %v1187_v51 = vmul.f32 %v1176_v58, %v1027_v53  ;;  %v3865_v41 = vsel %vm1317_vm6, %v1226_v32, %v1306_v54  ;;  %v1147_v6 = vmul.f32 %v1136_v35, %v1027_v53  ;;  %v1180_v18 = vrot.slane %v1108_v22, %v3449_v25 }
 0x1ec   : > { %v1267_v59 = vmul.f32 %v1256_v15, %v1027_v53  ;;  %v3023_v61 = vpack.c.bf16 %v3865_v41, %v3858_v46  ;;  %2922 = vmatmul.mubr.msk.f32.vlgmr.msra.gmra.mrb[4].mxu0 %vm1336_vm2, %v3735_v23  ;;  %v1220_v10 = vrot.slane %v1108_v22, %v3455_v30  ;;  %v1260_v60 = vrot.slane %v1108_v22, %v3457_v31 }
 0x1ed   : > { %v1283_v40 = vrot.slane %v1187_v51, 4  ;;  %v1227_v19 = vmul.f32 %v1216_v12, %v1027_v53  ;;  %v1188_v34 = vmul.f32 %v1180_v18, %v1028_v33  ;;  %2935 = vmatprep.mubr.msk.f32.mxu0 %vm1336_vm2, %v3464_v42  ;;  %v1148_v38 = vmul.f32 %v1140_v13, %v1028_v33 }
 0x1ee   : > { %v1307_v26 = vrot.slane %v1267_v59, 4  ;;  %3024 = vmatprep.subr.bf16.mxu1 %v3023_v61  ;;  %v1268_v39 = vmul.f32 %v1260_v60, %v1028_v33  ;;  %v1228_v31 = vmul.f32 %v1220_v10, %v1028_v33  ;;  %v4188_v5 = vmov 0.0  }
 0x1ef   : > { %v3877_v25 = vsel %vm1317_vm6, %v1147_v6, %v1283_v40  ;;  %3026 = vmatpush3.bf16.msra.mxu1 %v3023_v61  ;;  %v1284_v56 = vrot.slane %v1188_v34, 4 }
 0x1f0   : > { %v3880_v45 = vsel %vm1317_vm6, %v1227_v19, %v1307_v26  ;;  %v1308_v0 = vrot.slane %v1268_v39, 4 }
 0x1f1   : > { %v3027_v30 = vpack.c.bf16 %v3880_v45, %v3877_v25  ;;  %v3885_v44 = vsel %vm1317_vm6, %v1148_v38, %v1284_v56 }
 0x1f2   : > { %2929 = vmatmul.mubr.msk.f32.vlgmr.msra.gmra.mrb[8].mxu1 %vm1336_vm2, %v3735_v23  ;;  %v3890_v3 = vsel %vm1317_vm6, %v1228_v31, %v1308_v0 }
 0x1f3   : > { %3028 = vmatprep.subr.bf16.mxu0 %v3027_v30  ;;  %v3031_v4 = vpack.c.bf16 %v3890_v3, %v3885_v44  ;;  %2942 = vmatprep.mubr.msk.f32.mxu1 %vm1336_vm2, %v3464_v42  ;;  %v2160_v42 = vld [vmem:[%s4160_s5] sm:$0xff] }
 0x1f4   : > { %3030 = vmatpush3.bf16.msra.mxu0 %v3027_v30  ;;  %v3036_v1 = vpack.c.bf16 %v2161_v37, %v2160_v42 }
 0x1f5   : > { %3035 = vmatprep.subr.bf16.mxu0 %v4187_v8  ;;  %3032 = vmatprep.subr.bf16.mxu1 %v3031_v4 }
 0x1f6   : > { %3034 = vmatpush3.bf16.msra.mxu1 %v3031_v4 }
 0x1f7   : > { %2936 = vmatmul.mubr.msk.f32.vlgmr.msra.gmra.mrb[6].mxu0 %vm1336_vm2, %v3735_v23  ;;  %2956 = vmatprep.subr.mxu1 %v4188_v5 }
 0x1f8   : > { %2953 = vmatprep.mubr.msk.f32.mxu0 %vm3284_vm0, %v4188_v5  ;;  %3037 = vmatpush3.bf16.msra.mxu0 %v3036_v1 }
 0x1f9   : > { %2943 = vmatmul.mubr.msk.f32.vlgmr.msra.gmra.mrb[10].mxu1 %vm1336_vm2, %v3735_v23  ;;  %v2163_v23 = vld [vmem:[%s4160_s5 + $0x18] sm:$0xff]  ;;  %3038 = vmatprep.subr.bf16.mxu0 %v4187_v8 }
 0x1fa   : > { %2958 = vmatprep.mubr.msk.f32.mxu1 %vm3284_vm0, %v4188_v5  ;;  %v3039_v49 = vpack.c.bf16 %v2163_v23, %v2162_v55 }
 0x1fc   : > { %3040 = vmatpush3.bf16.msra.mxu0 %v3039_v49 }
 0x1fd   : > { %3047 = vmatprep.subr.bf16.mxu0 %v4187_v8 }
 0x1ff   : > { %2954 = vmatmul.mubr.msk.f32.vlgmr.msra.gmra.mrb[8].mxu0 %vm472_vm1, %v458_v50 }
 0x200   : > { %2988 = vmatprep.mubr.msk.f32.mxu0 %vm3284_vm0, %v4188_v5 }
 0x2ad   : > { %v2895_v24 = vpop.f32.mrb[0].mxu0 }
 0x2ae   : > { %v1944_v14 = vmul.f32 %v2895_v24, %v3705_v7  ;;  %v1409_v57 = vpop.f32.mrb[1].mxu0 }
 0x2af   : > { %v1943_v28 = vmul.f32 %v1409_v57, %v3702_v17 }
 0x2b0   : > { %v1961_v43 = vsel %vm1959_vm7, %v1944_v14, 0.0 }
 0x2b1   : > { %v1960_v27 = vsel %vm1959_vm7, %v1943_v28, 0.0  ;;  %v2902_v53 = vpop.f32.mrb[4].mxu1 }
 0x2b2   : > { %v1962_v11 = vadd.f32 %v1961_v43, %v1960_v27  ;;  %v1946_v62 = vmul.f32 %v2902_v53, %v3730_v63  ;;  %v1484_v29 = vpop.f32.mrb[5].mxu1 }
 0x2b3   : > { %v1945_v22 = vmul.f32 %v1484_v29, %v3722_v52 }
 0x2b4   : > { %v1970_v16 = vsel %vm1959_vm7, %v1946_v62, 0.0  ;;  %v1963_v35 = vrot.slane %v1962_v11, 4 }
 0x2b5   : > { %v1969_v47 = vsel %vm1959_vm7, %v1945_v22, 0.0 }
 0x2b6   : > { %v1971_v7 = vadd.f32 %v1970_v16, %v1969_v47  ;;  %v1964_v12 = vadd.f32 %v1963_v35, %v1962_v11 }
 0x2b8   : > { %v1972_v58 = vrot.slane %v1971_v7, 4  ;;  %v1965_v61 = vrot.slane %v1964_v12, 2 }
 0x2b9   : > { %v2909_v32 = vpop.f32.mrb[2].mxu0 }
 0x2ba   : > { %v1948_v17 = vmul.f32 %v2909_v32, %v3789_v2  ;;  %v1559_v54 = vpop.f32.mrb[3].mxu0  ;;  %v1973_v51 = vadd.f32 %v1972_v58, %v1971_v7  ;;  %v1966_v56 = vadd.f32 %v1965_v61, %v1964_v12 }
 0x2bb   : > { %v1947_v15 = vmul.f32 %v1559_v54, %v3776_v20 }
 0x2bc   : > { %v1979_v63 = vsel %vm1959_vm7, %v1948_v17, 0.0  ;;  %v1974_v10 = vrot.slane %v1973_v51, 2  ;;  %v1967_v49 = vrot.slane %v1966_v56, 1 }
 0x2bd   : > { %v2916_v33 = vpop.f32.mrb[6].mxu1  ;;  %v1978_v13 = vsel %vm1959_vm7, %v1947_v15, 0.0 }
 0x2be   : > { %v1950_v52 = vmul.f32 %v2916_v33, %v3806_v21  ;;  %v1634_v6 = vpop.f32.mrb[7].mxu1  ;;  %v1980_v59 = vadd.f32 %v1979_v63, %v1978_v13  ;;  %v1975_v31 = vadd.f32 %v1974_v10, %v1973_v51  ;;  %v1968_v22 = vadd.f32 %v1967_v49, %v1966_v56 }
 0x2bf   : > { %v1949_v18 = vmul.f32 %v1634_v6, %v3803_v48  ;;  %v2923_v2 = vpop.f32.mrb[4].mxu0 }
 0x2c0   : > { %v1988_v40 = vsel %vm1959_vm7, %v1950_v52, 0.0  ;;  %v1981_v60 = vrot.slane %v1980_v59, 4  ;;  %v1952_v19 = vmul.f32 %v2923_v2, %v3828_v36  ;;  %v1709_v26 = vpop.f32.mrb[5].mxu0  ;;  %v1976_v24 = vrot.slane %v1975_v31, 1 }
 0x2c1   : > { %v1987_v20 = vsel %vm1959_vm7, %v1949_v18, 0.0  ;;  %v1951_v21 = vmul.f32 %v1709_v26, %v3825_v9 }
 0x2c2   : > { %v1989_v34 = vadd.f32 %v1988_v40, %v1987_v20  ;;  %v1982_v39 = vadd.f32 %v1981_v60, %v1980_v59  ;;  %v1997_v38 = vsel %vm1959_vm7, %v1952_v19, 0.0  ;;  %v1977_v47 = vadd.f32 %v1976_v24, %v1975_v31 }
 0x2c3   : > { %v1996_v48 = vsel %vm1959_vm7, %v1951_v21, 0.0  ;;  %v2032_v59 = vmul.f32 0.5, %v1968_v22 }
 0x2c4   : > { %v1990_v30 = vrot.slane %v1989_v34, 4  ;;  %v1983_v0 = vrot.slane %v1982_v39, 2  ;;  %v1998_v4 = vadd.f32 %v1997_v38, %v1996_v48  ;;  %v2033_v18 = vmul.f32 0.5, %v1977_v47 }
 0x2c5   : > { %v2930_v37 = vpop.f32.mrb[8].mxu1 }
 0x2c6   : > { %v1991_v42 = vadd.f32 %v1990_v30, %v1989_v34  ;;  %v1984_v55 = vadd.f32 %v1983_v0, %v1982_v39  ;;  %v1954_v1 = vmul.f32 %v2930_v37, %v3865_v41  ;;  %v1999_v36 = vrot.slane %v1998_v4, 4  ;;  %v1784_v23 = vpop.f32.mrb[9].mxu1 }
 0x2c7   : > { %v1953_v9 = vmul.f32 %v1784_v23, %v3858_v46 }
 0x2c8   : > { %v1992_v50 = vrot.slane %v1991_v42, 2  ;;  %v2006_v14 = vsel %vm1959_vm7, %v1954_v1, 0.0  ;;  %v2000_v57 = vadd.f32 %v1999_v36, %v1998_v4  ;;  %v1985_v28 = vrot.slane %v1984_v55, 1 }
 0x2c9   : > { %v2005_v27 = vsel %vm1959_vm7, %v1953_v9, 0.0 }
 0x2ca   : > { %v1993_v43 = vadd.f32 %v1992_v50, %v1991_v42  ;;  %v2937_v53 = vpop.f32.mrb[6].mxu0  ;;  %v2001_v11 = vrot.slane %v2000_v57, 2  ;;  %v2007_v62 = vadd.f32 %v2006_v14, %v2005_v27  ;;  %v1986_v32 = vadd.f32 %v1985_v28, %v1984_v55 }
 0x2cb   : > { %v1956_v29 = vmul.f32 %v2937_v53, %v3880_v45  ;;  %v1859_v41 = vpop.f32.mrb[7].mxu0 }
 0x2cc   : > { %v1955_v16 = vmul.f32 %v1859_v41, %v3877_v25  ;;  %v2002_v35 = vadd.f32 %v2001_v11, %v2000_v57  ;;  %v2008_v46 = vrot.slane %v2007_v62, 4  ;;  %v2944_v58 = vpop.f32.mrb[10].mxu1  ;;  %v1994_v17 = vrot.slane %v1993_v43, 1 }
 0x2cd   : > { %v2015_v7 = vsel %vm1959_vm7, %v1956_v29, 0.0  ;;  %v1958_v54 = vmul.f32 %v2944_v58, %v3890_v3  ;;  %v1934_v15 = vpop.f32.mrb[11].mxu1  ;;  %v2034_v3 = vmul.f32 0.5, %v1986_v32 }
 0x2ce   : > { %v2014_v12 = vsel %vm1959_vm7, %v1955_v16, 0.0  ;;  %v2003_v51 = vrot.slane %v2002_v35, 1  ;;  %v2009_v63 = vadd.f32 %v2008_v46, %v2007_v62  ;;  %v1957_v33 = vmul.f32 %v1934_v15, %v3885_v44 }
 0x2cf   : > { %v2016_v45 = vadd.f32 %v2015_v7, %v2014_v12  ;;  %v2024_v25 = vsel %vm1959_vm7, %v1958_v54, 0.0  ;;  %v1995_v61 = vadd.f32 %v1994_v17, %v1993_v43  ;;  %v2049_v44 = vsel %vm2048_vm8, %v2033_v18, %v2032_v59 }
 0x2d0   : > { %v2010_v52 = vrot.slane %v2009_v63, 2  ;;  %v2023_v6 = vsel %vm1959_vm7, %v1957_v33, 0.0  ;;  %v2004_v2 = vadd.f32 %v2003_v51, %v2002_v35  ;;  %v2051_v30 = vsel %vm2050_vm9, %v2034_v3, %v2049_v44 }
 0x2d1   : > { %v2017_v13 = vrot.slane %v2016_v45, 4  ;;  %v2025_v40 = vadd.f32 %v2024_v25, %v2023_v6  ;;  %v2035_v34 = vmul.f32 0.5, %v1995_v61 }
 0x2d2   : > { %v2011_v10 = vadd.f32 %v2010_v52, %v2009_v63  ;;  %v2036_v39 = vmul.f32 0.5, %v2004_v2 }
 0x2d3   : > { %v2018_v60 = vadd.f32 %v2017_v13, %v2016_v45  ;;  %v2026_v20 = vrot.slane %v2025_v40, 4  ;;  %v2053_v42 = vsel %vm2052_vm10, %v2035_v34, %v2051_v30 }
 0x2d4   : > { %v2012_v19 = vrot.slane %v2011_v10, 1  ;;  %v2055_v55 = vsel %vm2054_vm11, %v2036_v39, %v2053_v42 }
 0x2d5   : > { %v2019_v26 = vrot.slane %v2018_v60, 2  ;;  %v2027_v21 = vadd.f32 %v2026_v20, %v2025_v40 }
 0x2d6   : > { %v2013_v38 = vadd.f32 %v2012_v19, %v2011_v10 }
 0x2d7   : > { %v2020_v56 = vadd.f32 %v2019_v26, %v2018_v60  ;;  %v2028_v48 = vrot.slane %v2027_v21, 2 }
 0x2d8   : > { %v2037_v0 = vmul.f32 0.5, %v2013_v38 }
 0x2d9   : > { %v2021_v31 = vrot.slane %v2020_v56, 1  ;;  %v2029_v4 = vadd.f32 %v2028_v48, %v2027_v21  ;;  %v2233_v48 = vpop.f32.mrb[8].mxu0 }
 0x2da   : > { %v2057_v49 = vsel %vm2056_vm12, %v2037_v0, %v2055_v55  ;;  %2957 = vmatpush3.msra.mxu1 %v2233_v48  ;;  %v2450_v48 = vld [vmem:[%s4164_s9] sm:$0xff] }
 0x2db   : > { %v2022_v37 = vadd.f32 %v2021_v31, %v2020_v56  ;;  %v2030_v1 = vrot.slane %v2029_v4, 1  ;;  %v2955_v31 = vpop.f32.mrb[9].mxu0  ;;  %3041 = vmatprep.subr.bf16.mxu1 %v4187_v8 }
 0x2dc   : > { %v2451_v31 = vld [vmem:[%s4164_s9 + $0x8] sm:$0xff] }
 0x2dd   : > { %v2038_v36 = vmul.f32 0.5, %v2022_v37  ;;  %v2031_v23 = vadd.f32 %v2030_v1, %v2029_v4 }
 0x2df   : > { %v2059_v50 = vsel %vm2058_vm13, %v2038_v36, %v2057_v49  ;;  %v2039_v9 = vmul.f32 0.5, %v2031_v23 }
 0x2e1   : > { %v2061_v24 = vsel %vm2060_vm14, %v2039_v9, %v2059_v50 }
 0x2e2   : > { %v2063_v14 = vsel %vm1959_vm7, %v2061_v24, -inf }
 0x2e3   : > { %2064 = vmax.xlane.f32.xlu1 %v2063_v14 }
 0x370   : > { %v2065_v57 = vpop.xlane.xlu1 %2064 }
 0x371   : > { %v2067_v28 = vrot.slane %v2065_v57, 1  ;;  %v2068_v43 = vrot.slane %v2065_v57, 2  ;;  %v2069_v27 = vrot.slane %v2065_v57, 3  ;;  %v2070_v53 = vrot.slane %v2065_v57, 4 }
 0x372   : > { %v2071_v11 = vrot.slane %v2065_v57, 5  ;;  %v2072_v62 = vrot.slane %v2065_v57, 6  ;;  %v2073_v29 = vrot.slane %v2065_v57, 7  ;;  %v2082_v41 = vsub.f32 %v2032_v59, %v2065_v57 }
 0x373   : > { %v2083_v22 = vsub.f32 %v2033_v18, %v2067_v28  ;;  %v2084_v16 = vsub.f32 %v2034_v3, %v2068_v43  ;;  %v2085_v47 = vsub.f32 %v2035_v34, %v2069_v27  ;;  %v2086_v35 = vsub.f32 %v2036_v39, %v2070_v53 }
 0x374   : > { %v2087_v46 = vsub.f32 %v2037_v0, %v2071_v11  ;;  %v2090_v7 = vmul.f32 1.442695, %v2082_v41  ;;  %v2088_v58 = vsub.f32 %v2038_v36, %v2072_v62  ;;  %v2089_v12 = vsub.f32 %v2039_v9, %v2073_v29 }
 0x375   : > { %v2092_v32 = vmul.f32 1.442695, %v2083_v22  ;;  %v2094_v17 = vmul.f32 1.442695, %v2084_v16  ;;  %v2096_v54 = vmul.f32 1.442695, %v2085_v47 }
 0x376   : > { %3144 = vpow2.f32 %v2090_v7  ;;  %v2098_v15 = vmul.f32 1.442695, %v2086_v35  ;;  %v2100_v51 = vmul.f32 1.442695, %v2087_v46  ;;  %v2102_v63 = vmul.f32 1.442695, %v2088_v58 }
 0x377   : > { %3146 = vpow2.f32 %v2092_v32  ;;  %v2104_v45 = vmul.f32 1.442695, %v2089_v12 }
 0x378   : > { %3148 = vpow2.f32 %v2094_v17 }
 0x379   : > { %3150 = vpow2.f32 %v2096_v54 }
 0x37a   : > { %3152 = vpow2.f32 %v2098_v15 }
 0x37b   : > { %3154 = vpow2.f32 %v2100_v51  ;;  %v2785_v51 = vld [vmem:[%s4160_s5 + $0x20] ss:$0 sm:$0xff] }
 0x37c   : > { %3156 = vpow2.f32 %v2102_v63 }
 0x37d   : > { %3158 = vpow2.f32 %v2104_v45 }
 0x380   : > { %v3145_v33 = vpop.eup %3144 }
 0x381   : > { %v3147_v25 = vpop.eup %3146 }
 0x382   : > { %v3149_v52 = vpop.eup %3148  ;;  %v2114_v13 = vrot.slane %v3147_v25, 7 }
 0x383   : > { %v3151_v6 = vpop.eup %3150  ;;  %v2116_v59 = vrot.slane %v3149_v52, 6 }
 0x384   : > { %v3153_v18 = vpop.eup %3152  ;;  %v2115_v61 = vsel %vm2048_vm8, %v2114_v13, %v3145_v33  ;;  %v2118_v40 = vrot.slane %v3151_v6, 5 }
 0x385   : > { %v3155_v3 = vpop.eup %3154  ;;  %v2117_v2 = vsel %vm2050_vm9, %v2116_v59, %v2115_v61  ;;  %v2120_v10 = vrot.slane %v3153_v18, 4 }
 0x386   : > { %v3157_v60 = vpop.eup %3156  ;;  %v2119_v20 = vsel %vm2052_vm10, %v2118_v40, %v2117_v2  ;;  %v2122_v19 = vrot.slane %v3155_v3, 3  ;;  %v2365_v2 = vld [vmem:[%s4163_s8 + $0x10] sm:$0xff] }
 0x387   : > { %v3159_v26 = vpop.eup %3158  ;;  %v2121_v44 = vsel %vm2054_vm11, %v2120_v10, %v2119_v20  ;;  %v2124_v34 = vrot.slane %v3157_v60, 2 }
 0x388   : > { %v2123_v21 = vsel %vm2056_vm12, %v2122_v19, %v2121_v44  ;;  %v2126_v39 = vrot.slane %v3159_v26, 1 }
 0x389   : > { %v2125_v38 = vsel %vm2058_vm13, %v2124_v34, %v2123_v21  ;;  %v2787_v21 = vld [vmem:[%s4162_s7] ss:$0 sm:$0xff] }
 0x38a   : > { %v2127_v56 = vsel %vm2060_vm14, %v2126_v39, %v2125_v38  ;;  %v2788_v38 = vld [vmem:[%s4162_s7 + $0x1] ss:$0 sm:$0xff] }
 0x38b   : > { %v2129_v30 = vsel %vm1959_vm7, %v2127_v56, 0.0 }
 0x38c   : > { %2130 = vadd.xlane.f32.xlu0 %v2129_v30 }
 0x419   : > { %v2131_v0 = vpop.xlane.xlu0 %2130 }
 0x41a   : > { %3160 = vrcp.f32 %v2131_v0 }
 0x424   : > { %v3161_v4 = vpop.eup %3160 }
 0x425   : > { %v2133_v42 = vmul.f32 %v3161_v4, %v2131_v0  ;;  %v3048_v0 = vpack.c.bf16 %v2451_v31, %v2450_v48 }
 0x427   : > { %v2134_v37 = vsub.f32 2.0, %v2133_v42  ;;  %3049 = vmatpush3.bf16.msra.mxu0 %v3048_v0  ;;  %v2453_v42 = vld [vmem:[%s4164_s9 + $0x18] sm:$0xff] }
 0x428   : > { %3050 = vmatprep.subr.bf16.mxu0 %v4187_v8 }
 0x429   : > { %v2135_v55 = vmul.f32 %v3161_v4, %v2134_v37  ;;  %v2452_v4 = vld [vmem:[%s4164_s9 + $0x10] sm:$0xff] }
 0x42a   : > { %v3051_v37 = vpack.c.bf16 %v2453_v42, %v2452_v4 }
 0x42b   : > { %v2137_v1 = vrot.slane %v2135_v55, 1  ;;  %v2138_v36 = vrot.slane %v2135_v55, 2  ;;  %v2139_v23 = vrot.slane %v2135_v55, 3  ;;  %v2140_v49 = vrot.slane %v2135_v55, 4 }
 0x42c   : > { %v2141_v50 = vrot.slane %v2135_v55, 5  ;;  %v2142_v9 = vrot.slane %v2135_v55, 6  ;;  %v2143_v24 = vrot.slane %v2135_v55, 7  ;;  %v2152_v27 = vmul.f32 %v3145_v33, %v2135_v55  ;;  %3052 = vmatpush3.bf16.msra.mxu0 %v3051_v37  ;;  %v2454_v55 = vld [vmem:[%s4164_s9 + $0x20] sm:$0xff] }
 0x42d   : > { %v2153_v14 = vmul.f32 %v3147_v25, %v2137_v1  ;;  %v2154_v57 = vmul.f32 %v3149_v52, %v2138_v36  ;;  %v2155_v28 = vmul.f32 %v3151_v6, %v2139_v23  ;;  %v2156_v43 = vmul.f32 %v3153_v18, %v2140_v49  ;;  %v3170_v25 = vld [vmem:[%s3434_s24] sm:$0xff]  ;;  %3053 = vmatprep.subr.bf16.mxu0 %v4187_v8  ;;  %v2455_v1 = vld [vmem:[%s4164_s9 + $0x28] sm:$0xff]  ;;  %v2456_v23 = vld [vmem:[%s4164_s9 + $0x30] sm:$0xff]  ;;  %s3175_s24 = sshll.u32 %s3287_s26, 4  ;;  %s3176_s24 = int_to_ptr.vmem [resolvable:$false] %s3175_s24 }
 0x42e   : > { %v2157_v53 = vmul.f32 %v3155_v3, %v2141_v50  ;;  %v2158_v29 = vmul.f32 %v3157_v60, %v2142_v9  ;;  %v2159_v41 = vmul.f32 %v3159_v26, %v2143_v24  ;;  %v2364_v3 = vld [vmem:[%s4163_s8 + $0x8] sm:$0xff]  ;;  %v2366_v60 = vld [vmem:[%s4163_s8 + $0x18] sm:$0xff]  ;;  %v3054_v36 = vpack.c.bf16 %v2455_v1, %v2454_v55  ;;  %v2789_v9 = vld [vmem:[%s4163_s8 + $0x20] ss:$0 sm:$0xff]  ;;  %s3177_s28 = scalar_lea.vmem %s3176_s24, 256  ;;  %p3178_p1 = scmp.lt.s32.totalorder %s2627_s14, %s3176_s24 }
 0x42f   : > { %v2250_v11 = vrot.slane %v2153_v14, 7  ;;  %v2252_v62 = vrot.slane %v2154_v57, 6  ;;  %v2254_v16 = vrot.slane %v2155_v28, 5  ;;  %v2256_v35 = vrot.slane %v2156_v43, 4  ;;  %v2457_v49 = vld [vmem:[%s4164_s9 + $0x38] sm:$0xff]  ;;  %p3179_p2 = scmp.lt.s32.totalorder %s3177_s28, %s3171_s23 }
 0x430   : > { %v2258_v7 = vrot.slane %v2157_v53, 3  ;;  %v2260_v32 = vrot.slane %v2158_v29, 2  ;;  %v2262_v54 = vrot.slane %v2159_v41, 1  ;;  %v3045_v20 = vpack.c.bf16 %v2366_v60, %v2365_v2  ;;  %3055 = vmatpush3.bf16.msra.mxu0 %v3054_v36 }
 0x431   : > { %v2251_v22 = vsel %vm2048_vm8, %v2250_v11, %v2152_v27  ;;  %v3057_v50 = vpack.c.bf16 %v2457_v49, %v2456_v23  ;;  %3056 = vmatprep.subr.bf16.mxu0 %v4187_v8  ;;  %p3180_p3 = por %p3179_p2, %p3178_p1 }
 0x432   : > { %v2253_v47 = vsel %vm2050_vm9, %v2252_v62, %v2251_v22 }
 0x433   : > { %v2255_v46 = vsel %vm2052_vm10, %v2254_v16, %v2253_v47  ;;  %p3181_p5 = pnand %p3180_p3, %p3174_p0 }
 0x434   : > { %v2257_v58 = vsel %vm2054_vm11, %v2256_v35, %v2255_v46  ;;  %3058 = vmatpush3.bf16.msra.mxu0 %v3057_v50 }
 0x435   : > { %v2259_v17 = vsel %vm2056_vm12, %v2258_v7, %v2257_v58 }
 0x436   : > { %v2261_v12 = vsel %vm2058_vm13, %v2260_v32, %v2259_v17 }
 0x437   : > { %v2263_v15 = vsel %vm2060_vm14, %v2262_v54, %v2261_v12 }
 0x438   : > { %2959 = vmatmul.mubr.msk.f32.vlgmr.msra.gmra.mrb[12].mxu1 %vm1959_vm7, %v2263_v15  ;;  %2591 = vst.msk [vmem:[%s3991_s3] sm:$0xff] %vm1959_vm7, %v2263_v15  ;;  %v2793_v15 = vld [vmem:[%s4162_s7 + $0x2] ss:$0 sm:$0xff] }
 0x439   : > { %2969 = vmatprep.mubr.msk.f32.mxu1 %vm3284_vm0, %v4188_v5  ;;  %v2363_v5 = vld [vmem:[%s4163_s8] sm:$0xff] }
 0x43a   : > { %v3042_v10 = vpack.c.bf16 %v2364_v3, %v2363_v5 }
 0x43c   : > { %3043 = vmatpush3.bf16.msra.mxu1 %v3042_v10 }
 0x43d   : > { %3044 = vmatprep.subr.bf16.mxu1 %v4187_v8  ;;  %v2791_v8 = vld [vmem:[%s4164_s9 + $0x40] ss:$0 sm:$0xff] }
 0x440   : > { %3046 = vmatpush3.bf16.msra.mxu1 %v3045_v20 }
 0x50b   : > { %v2332_v63 = vpop.f32.mrb[12].mxu1 }
 0x50c   : > { %v2333_v45 = vadd.f32 %v2785_v51, %v2332_v63  ;;  %v2960_v33 = vpop.f32.mrb[13].mxu1  ;;  %v2794_v63 = vld [vmem:[%s4162_s7 + $0x3] ss:$0 sm:$0xff] }
 0x50e   : > { %v2336_v52 = vadd.f32 %v3170_v25, %v2333_v45 }
 0x510   : > { %v2339_v13 = vsel %vm472_vm1, %v2336_v52, 0.0 }
 0x511   : > { %2340 = vadd.xlane.f32.xlu0 %v2339_v13 }
 0x59e   : > { %v2341_v6 = vpop.xlane.xlu0 %2340 }
 0x59f   : > { %v2343_v59 = vmul.f32 0.03125, %v2341_v6 }
 0x5a1   : > { %v2344_v18 = vsub.f32 %v2336_v52, %v2343_v59 }
 0x5a3   : > { %v2345_v61 = vmul.f32 %v2344_v18, %v2344_v18 }
 0x5a5   : > { %v2346_v40 = vsel %vm472_vm1, %v2345_v61, 0.0 }
 0x5a6   : > { %2347 = vadd.xlane.f32.xlu1 %v2346_v40 }
 0x633   : > { %v2348_v19 = vpop.xlane.xlu1 %2347 }
 0x634   : > { %v2349_v26 = vmul.f32 0.03125, %v2348_v19 }
 0x636   : > { %v2350_v44 = vadd.f32 1e-05, %v2349_v26 }
 0x638   : > { %3162 = vrsqrt.f32 %v2350_v44 }
 0x642   : > { %v3163_v34 = vpop.eup %3162 }
 0x643   : > { %v2352_v39 = vmul.f32 %v3163_v34, %v2344_v18 }
 0x645   : > { %v2357_v56 = vmul.f32 %v2787_v21, %v2352_v39 }
 0x647   : > { %v2362_v30 = vadd.f32 %v2788_v38, %v2357_v56 }
 0x649   : > { %2970 = vmatmul.mubr.msk.f32.vlgmr.msra.gmra.mrb[14].mxu1 %vm472_vm1, %v2362_v30 }
 0x71c   : > { %v2441_v24 = vpop.f32.mrb[14].mxu1 }
 0x71d   : > { %v2442_v14 = vadd.f32 %v2789_v9, %v2441_v24  ;;  %v2971_v57 = vpop.f32.mrb[15].mxu1 }
 0x71f   : > { %v2446_v28 = vmul.f32 0.70710677, %v2442_v14  ;;  %v2445_v27 = vmul.f32 0.5, %v2442_v14 }
 0x721   : > { %3164 = verf.f32 %v2446_v28 }
 0x72b   : > { %v3165_v43 = vpop.eup %3164 }
 0x72c   : > { %v2448_v53 = vadd.f32 1.0, %v3165_v43 }
 0x72e   : > { %v2449_v11 = vmul.f32 %v2448_v53, %v2445_v27 }
 0x730   : > { %2989 = vmatmul.mubr.msk.f32.vlgmr.msra.gmra.mrb[10].mxu0 %vm2463_vm15, %v2449_v11 }
 0x803   : > { %v2533_v62 = vpop.f32.mrb[10].mxu0 }
 0x804   : > { %v2534_v29 = vadd.f32 %v2791_v8, %v2533_v62  ;;  %v2990_v41 = vpop.f32.mrb[11].mxu0 }
 0x806   : > { %v2537_v22 = vadd.f32 %v2534_v29, %v2362_v30 }
 0x808   : > { %v2540_v16 = vsel %vm472_vm1, %v2537_v22, 0.0 }
 0x809   : > { %2541 = vadd.xlane.f32.xlu0 %v2540_v16 }
 0x896   : > { %v2542_v47 = vpop.xlane.xlu0 %2541 }
 0x897   : > { %v2543_v35 = vmul.f32 0.03125, %v2542_v47 }
 0x899   : > { %v2544_v46 = vsub.f32 %v2537_v22, %v2543_v35 }
 0x89b   : > { %v2545_v7 = vmul.f32 %v2544_v46, %v2544_v46 }
 0x89d   : > { %v2546_v58 = vsel %vm472_vm1, %v2545_v7, 0.0 }
 0x89e   : > { %2547 = vadd.xlane.f32.xlu1 %v2546_v58 }
 0x92b   : > { %v2548_v32 = vpop.xlane.xlu1 %2547 }
 0x92c   : > { %v2549_v17 = vmul.f32 0.03125, %v2548_v32 }
 0x92e   : > { %v2550_v54 = vadd.f32 1e-05, %v2549_v17 }
 0x930   : > { %3166 = vrsqrt.f32 %v2550_v54 }
 0x93a   : > { %v3167_v12 = vpop.eup %3166 }
 0x93b   : > { %v2552_v51 = vmul.f32 %v3167_v12, %v2544_v46 }
 0x93d   : > { %v2557_v45 = vmul.f32 %v2793_v15, %v2552_v51 }
 0x93f   : > { %v2562_v33 = vadd.f32 %v2794_v63, %v2557_v45 }
 0x941   : > { %v2563_v25 = vadd.f32 %v2562_v33, %v2362_v30 }
 0x943   : > { %v2566_v52 = vsel %vm472_vm1, %v2563_v25, 0.0 }
 0x944   : > { %2567 = vadd.xlane.f32.xlu0 %v2566_v52 }
 0x9d1   : > { %v2568_v13 = vpop.xlane.xlu0 %2567 }
 0x9d2   : > { %v2569_v6 = vmul.f32 0.03125, %v2568_v13 }
 0x9d4   : > { %v2570_v59 = vsub.f32 %v2563_v25, %v2569_v6 }
 0x9d6   : > { %v2571_v18 = vmul.f32 %v2570_v59, %v2570_v59 }
 0x9d8   : > { %v2572_v61 = vsel %vm472_vm1, %v2571_v18, 0.0 }
 0x9d9   : > { %2573 = vadd.xlane.f32.xlu1 %v2572_v61 }
 0x9da   : > { %3184 = shalt.err (!%p3181_p5)
}
 0x9db   : > { %s3185_s3 = scalar_lea.hbm %s4072_s13, 128  ;;  %s3189_s26 = scalar_lea.hbm %s4166_s11, 256 }
 0x9dc   : > { %p3186_p6 = scmp.ne.s32.totalorder %s4072_s13, %s3185_s3  ;;  %p3190_p10 = scmp.lt.u32.totalorder %s4072_s13, %s4166_s11 }
 0x9dd   : > { %p3191_p11 = scmp.lt.u32.totalorder %s3189_s26, %s3185_s3  ;;  %p3193_p13 = scmp.lt.u32.totalorder %s3185_s3, %s4072_s13 }
 0x9de   : > { %p3187_p7 = pnand %p3186_p6, %p3389_p4 }
 0x9df   : > { %p3192_p12 = por %p3191_p11, %p3190_p10 }
 0x9e0   : > { %p3188_p9 = pneg %p3187_p7 }
 0x9e1   : > { %p3194_p0 = por %p3193_p13, %p3192_p12 }
 0x9e3   : > { %p3195_p1 = pnand %p3194_p0, %p3188_p9 }
 0x9e5   : > { %3198 = shalt.err (!%p3195_p1)
}
 0x9e6   : > { %3060 = dma.vmem_to_hbm [thread:$0]  (%p3389_p4), %s2627_s14, 128, %s4072_s13, %s2598_s16   ;;  %v2795_v10 = vld [vmem:[%s4162_s7 + $0x4] ss:$0 sm:$0xff]  ;;  %v2796_v20 = vld [vmem:[%s4162_s7 + $0x5] ss:$0 sm:$0xff] }
 0x9e7   : > { %s433_s15 = scalar_lea.vmem [#allocation2], %s2759_s2  ;;  %s4190_s13 = sshll.u32 %s3273_s20, 7 }
 0x9e8   : > { %s2612_s4 = sshll.u32 %s433_s15, 4  ;;  %s4106_s26 = scalar_lea.hbm %s4165_s10, %s4190_s13  ;;  %s4108_s4 = int_to_ptr.vmem [resolvable:$true] %s2612_s4 }
 0x9e9   : > { %s2593_s24 = scalar_lea.sflag [#allocation3], %s3978_s0  ;;  %s3199_s12 = scalar_lea.vmem %s4108_s4, 128 }
 0x9ea   : > { %p3200_p2 = scmp.ne.s32.totalorder %s4108_s4, %s3199_s12  ;;  %s3288_s2 = smov [#allocation2]  }
 0x9eb   : > { %s3203_s20 = sshll.u32 %s3288_s2, 4  ;;  %s3204_s20 = int_to_ptr.vmem [resolvable:$false] %s3203_s20 }
 0x9ec   : > { %p3201_p3 = pnand %p3200_p2, %p3389_p4  ;;  %s3205_s23 = scalar_lea.vmem %s3204_s20, 256 }
 0x9ed   : > { %p3206_p6 = scmp.lt.s32.totalorder %s4108_s4, %s3204_s20  ;;  %p3207_p7 = scmp.lt.s32.totalorder %s3205_s23, %s3199_s12 }
 0x9ee   : > { %p3202_p5 = pneg %p3201_p3 }
 0x9ef   : > { %p3208_p9 = por %p3207_p7, %p3206_p6 }
 0x9f1   : > { %p3209_p10 = pnand %p3208_p9, %p3202_p5 }
 0xa66   : > { %v2574_v40 = vpop.xlane.xlu1 %2573 }
 0xa67   : > { %v2575_v5 = vmul.f32 0.03125, %v2574_v40 }
 0xa69   : > { %v2576_v3 = vadd.f32 1e-05, %v2575_v5 }
 0xa6b   : > { %3168 = vrsqrt.f32 %v2576_v3 }
 0xa75   : > { %v3169_v2 = vpop.eup %3168 }
 0xa76   : > { %v2578_v60 = vmul.f32 %v3169_v2, %v2570_v59 }
 0xa78   : > { %v2583_v19 = vmul.f32 %v2795_v10, %v2578_v60 }
 0xa7a   : > { %v2588_v26 = vadd.f32 %v2796_v20, %v2583_v19 }
 0xa7c   : > { %2589 = vst.msk [vmem:[%s433_s15] sm:$0xff] %vm472_vm1, %v2588_v26 }
 0xa7d   : > { %3212 = shalt.err (!%p3209_p10)
}
 0xa7e   : > { %s3213_s0 = scalar_lea.hbm %s4106_s26, 128  ;;  %s3217_s15 = scalar_lea.hbm %s4165_s10, 256 }
 0xa7f   : > { %p3214_p11 = scmp.ne.s32.totalorder %s4106_s26, %s3213_s0  ;;  %p3218_p0 = scmp.lt.u32.totalorder %s4106_s26, %s4165_s10 }
 0xa80   : > { %p3219_p1 = scmp.lt.u32.totalorder %s3217_s15, %s3213_s0  ;;  %p3221_p3 = scmp.lt.u32.totalorder %s3213_s0, %s4106_s26 }
 0xa81   : > { %p3215_p12 = pnand %p3214_p11, %p3389_p4 }
 0xa82   : > { %p3220_p2 = por %p3219_p1, %p3218_p0 }
 0xa83   : > { %p3216_p13 = pneg %p3215_p12 }
 0xa84   : > { %p3222_p5 = por %p3221_p3, %p3220_p2 }
 0xa86   : > { %p3223_p6 = pnand %p3222_p5, %p3216_p13 }
 0xa88   : > { %3226 = shalt.err (!%p3223_p6)
}
 0xa89   : > { %3059 = dma.vmem_to_hbm [thread:$0]  (%p3389_p4), %s4108_s4, 128, %s4106_s26, %s2593_s24  }
 0xa8a PF: > { %p3070_p7 = scmp.ge.s32.totalorder %s3281_s22, 2  ;;  %s2638_s16 = sand.u32 1, %s3261_s17  }
 0xa8b   : > { %s2639_s12 = scalar_lea.sflag [#allocation3], %s2638_s16 }
 0xa8c   : > { %p3064_p9 = pnand %p3070_p7, %p3396_p8 }
 0xa8e   : > { %3252 = dma.done.wait (!%p3064_p9), %s2639_s12, 128  }
 0xa8f   : > { %3254 = vsyncadd (!%p3064_p9), %s2639_s12, 4294967168  ;;  %s2648_s2 = scalar_lea.sflag [#allocation5], %s2638_s16 }
 0xa90   : > { %3256 = dma.done.wait (!%p3064_p9), %s2648_s2, 128  }
 0xa91   : > { %3258 = vsyncadd (!%p3064_p9), %s2648_s2, 4294967168  ;;  %s28_s22 = sadd.s32 1, %s3281_s22   ;;  %s4191_s17 = smov %s3265_s18 }
 0xa92   : > { %p25_p10 = scmp.ge.s32.totalorder %s28_s22, 4   ;;  %s4192_s18 = smov %s3269_s19 }
 0xa93   : > { %s4193_s19 = smov %s3402_s30  ;;  %s4194_s20 = smov %s3277_s21 }
 0xa94   : > { %s4195_s21 = smov %s4197_s25  ;;  %27 = sbr.rel (!%p25_p10) target bundleno = 11 (0xb), region = 118 }
 0xa9b   :  { %2653 = vsyncpa [#allocation3], 1 }
 0xa9c   :  { %2655 = vsyncpa [#allocation3 + $0x1], 1 }
 0xa9d   :  { %2656 = vsyncpa [#allocation5], 1 }
 0xa9e   :  { %2658 = vsyncpa [#allocation5 + $0x1], 1 }

</bundles_post_ra>
